<compile_context>
chip_gen: v7x
topology: tpu7x:2x2x1
jax: 0.10.0
libtpu: 0.0.40
codegen_flags: <defaults>
</compile_context>

<pallas_src>
import functools

import jax
import jax.numpy as jnp
from jax import lax
from jax.experimental import pallas as pl
from jax.experimental.pallas import tpu as pltpu


# ----------------------------------------------------------------------------
# Exact-erf GELU (matches torch.nn.GELU() default), built only from ops with
# guaranteed Mosaic lowerings (exp / mul / div / select).
# ----------------------------------------------------------------------------
def _erf_approx(x):
    # Abramowitz & Stegun 7.1.26 polynomial erf, max abs error ~1.5e-7.
    a1, a2, a3, a4, a5 = (0.254829592, -0.284496736, 1.421413741,
                          -1.453152027, 1.061405429)
    p = 0.3275911
    ax = jnp.abs(x)
    t = 1.0 / (1.0 + p * ax)
    poly = ((((a5 * t + a4) * t + a3) * t + a2) * t + a1) * t
    y = 1.0 - poly * jnp.exp(-ax * ax)
    return jnp.where(x >= 0.0, y, -y)


def _gelu_exact(x):
    return 0.5 * x * (1.0 + _erf_approx(x * 0.7071067811865476))


# ----------------------------------------------------------------------------
# Pallas kernel factory: in-kernel im2col + single full-Kc MXU matmul + fused
# bias/GELU epilogue, lane-dense channels-first output store.
# ----------------------------------------------------------------------------
def _make_kernel(K, Cin, Wout, th):
    Kc = Cin * K * K
    M_t = th * Wout

    def kernel(x_ref, w_ref, b_ref, o_ref, patch_ref):
        # x_ref:     (Hpad_total, Wpad, Cin) bf16  whole padded frame, resident per batch
        # w_ref:     (Cout, Kc)              bf16  resident (constant index_map)
        # b_ref:     (Cout, 1)               f32   resident
        # o_ref:     (Cout, M_t)                   activated conv tile, channels-first
        # patch_ref: (th, Wout, Kc)          bf16  scratch: in-kernel im2col tile
        t = pl.program_id(1)
        row0 = t * th

        # In-kernel im2col: K*K VMEM->VMEM slice copies (no HBM inflation).
        # Patch column order is (kh, kw, cin), cin fastest, matching w_ref's flatten.
        for kh in range(K):
            for kw in range(K):
                col0 = (kh * K + kw) * Cin
                patch_ref[:, :, col0:col0 + Cin] = (
                    x_ref[pl.ds(row0 + kh, th), pl.ds(kw, Wout), :])

        # Collapse leading dims only (lane dim Kc unchanged) -> (M_t, Kc), then a single
        # full-Kc MXU contraction with bf16 operands and f32 accumulation.
        patches = patch_ref[...].reshape(M_t, Kc)
        acc = jnp.dot(w_ref[...], patches.T, preferred_element_type=jnp.float32)
        acc = acc + b_ref[...]                       # broadcast along lanes (f32)
        o_ref[...] = _gelu_exact(acc).astype(o_ref.dtype)

    return kernel


# ----------------------------------------------------------------------------
# VMEM-budget-driven row-tile selection (replaces the fixed bm candidate table).
# ----------------------------------------------------------------------------
def _round_up(v, m):
    return -(-v // m) * m


def _pick_tile_rows(Hout, Wout, Cin, Cout, Kc, Wpad, K, in_bytes=2, out_bytes=4):
    budget = 40 << 20                      # conservative: fits every generation's VMEM
    cin_al = _round_up(Cin, 128)           # lane padding of the channels-last frame
    kc_al = _round_up(Kc, 128)             # lane padding of the patch scratch
    th = max(1, min(Hout, max(1, 4096 // max(Wout, 1))))   # ~4K-lane output tiles

    def need(th_):
        m_al = _round_up(th_ * Wout, 128)
        frame = cin_al * (Hout + th_ + K - 1) * Wpad * in_bytes
        return (2 * frame                                    # double-buffered frame
                + th_ * Wout * kc_al * in_bytes              # patch scratch
                + 3 * Cout * m_al * out_bytes                # acc + double-buffered out
                + 2 * (Cout * kc_al * in_bytes + Cout * 128 * out_bytes))  # w + b

    while th > 1 and need(th) > budget:
        th = max(1, th // 2)
    return th, need(th)


# ----------------------------------------------------------------------------
# Wrapper: layout glue (pad / NHWC / bf16 cast), pallas_call, single
# de-tile + PixelShuffle transpose pass straight to NCHW.
# ----------------------------------------------------------------------------
@functools.partial(jax.jit, static_argnames=("stride", "padding", "bf16_operands"))
def hnerv_block(x_nchw, w_oihw, bias, *, stride, padding, bf16_operands=True):
    """Conv2d(ngf, new_ngf*stride^2, K, stride=1, padding) -> PixelShuffle(stride) -> GELU."""
    N, Cin, H, W = x_nchw.shape
    Cout, Cin_w, K, K2 = w_oihw.shape
    assert Cin_w == Cin and K == K2, (w_oihw.shape, x_nchw.shape)
    assert Cout % (stride * stride) == 0, (Cout, stride)
    new_ngf = Cout // (stride * stride)

    Hout = H + 2 * padding - (K - 1)
    Wout = W + 2 * padding - (K - 1)
    assert Hout > 0 and Wout > 0, (Hout, Wout)
    Wpad = W + 2 * padding
    Kc = Cin * K * K

    op_dtype = jnp.bfloat16 if bf16_operands else x_nchw.dtype

    th, vmem_need = _pick_tile_rows(Hout, Wout, Cin, Cout, Kc, Wpad, K,
                                    in_bytes=jnp.dtype(op_dtype).itemsize)
    T = -(-Hout // th)                    # row tiles (any Hout, no whole-frame fallback)
    Hout_pad = T * th
    extra_rows = Hout_pad - Hout
    M_t = th * Wout
    Hpad_total = Hout_pad + K - 1

    # Layout glue (one fused XLA pass): NCHW -> NHWC, zero-pad (+ tail rows), bf16 cast.
    x_nhwc = jnp.transpose(x_nchw, (0, 2, 3, 1))
    x_pad = jnp.pad(x_nhwc, ((0, 0),
                             (padding, padding + extra_rows),
                             (padding, padding),
                             (0, 0))).astype(op_dtype)
    # Weight flattened to match the (kh, kw, cin) patch-column order.
    w_flat = jnp.transpose(w_oihw, (0, 2, 3, 1)).reshape(Cout, Kc).astype(op_dtype)
    b_col = bias.reshape(Cout, 1).astype(jnp.float32)

    kernel = _make_kernel(K, Cin, Wout, th)
    vmem_limit = int(min(max(vmem_need + (8 << 20), 32 << 20), 56 << 20))

    y = pl.pallas_call(
        kernel,
        out_shape=jax.ShapeDtypeStruct((N, T, Cout, M_t), x_nchw.dtype),
        grid=(N, T),
        in_specs=[
            # Whole padded frame: constant index along the row-tile axis, so it is
            # DMA'd once per image and reused across all row tiles.
            pl.BlockSpec((None, Hpad_total, Wpad, Cin), lambda n, t: (n, 0, 0, 0)),
            pl.BlockSpec((Cout, Kc), lambda n, t: (0, 0)),   # resident weight
            pl.BlockSpec((Cout, 1), lambda n, t: (0, 0)),    # resident bias
        ],
        out_specs=pl.BlockSpec((None, None, Cout, M_t), lambda n, t: (n, t, 0, 0)),
        scratch_shapes=[pltpu.VMEM((th, Wout, Kc), op_dtype)],
        compiler_params=pltpu.CompilerParams(
            dimension_semantics=("parallel", "parallel"),
            vmem_limit_bytes=vmem_limit),
    )(x_pad, w_flat, b_col)

    # De-tile + PixelShuffle in a single reshape/transpose pass (PyTorch convention:
    # c_out = c*r*r + i*r + j ->  out[n, c, (t*th+h)*r + i, w*r + j]).
    r = stride
    y = y.reshape(N, T, new_ngf, r, r, th, Wout)
    y = jnp.transpose(y, (0, 2, 1, 5, 3, 6, 4))
    y = y.reshape(N, new_ngf, Hout_pad * r, Wout * r)
    return y[:, :, :Hout * r, :]


# ----------------------------------------------------------------------------
# Pure-JAX reference (independent path: XLA conv + PixelShuffle + exact GELU).
# ----------------------------------------------------------------------------
def hnerv_block_ref(x_nchw, w_oihw, bias, *, stride, padding):
    y = lax.conv_general_dilated(
        x_nchw, w_oihw, window_strides=(1, 1),
        padding=[(padding, padding), (padding, padding)],
        dimension_numbers=("NCHW", "OIHW", "NCHW"),
        precision=lax.Precision.HIGHEST)
    y = y + bias.reshape(1, -1, 1, 1)
    N, Cout, Hout, Wout = y.shape
    r = stride
    new_ngf = Cout // (r * r)
    y = y.reshape(N, new_ngf, r, r, Hout, Wout)
    y = jnp.transpose(y, (0, 1, 4, 2, 5, 3)).reshape(N, new_ngf, Hout * r, Wout * r)
    # act(PixelShuffle(conv(x))); act is elementwise, so applying it pre-shuffle in the
    # kernel is equivalent.  nn.GELU default = exact erf form.
    return jax.nn.gelu(y, approximate=False)


if __name__ == "__main__":
    # HNeRVBlock(ngf=8, new_ngf=4, kernel=3, stride=2, padding=1, act='gelu')
    ngf, new_ngf, kernel_size, stride, padding = 8, 4, 3, 2, 1
    N, H, W = 2, 16, 16
    Cout = new_ngf * stride * stride

    key = jax.random.PRNGKey(0)
    kx, kw, kb = jax.random.split(key, 3)

    # PyTorch-style uniform init, OIHW weight layout (as in nn.Conv2d).
    fan_in = ngf * kernel_size * kernel_size
    bound = 1.0 / (fan_in ** 0.5)
    w_oihw = jax.random.uniform(kw, (Cout, ngf, kernel_size, kernel_size),
                                jnp.float32, -bound, bound)
    bias = jax.random.uniform(kb, (Cout,), jnp.float32, -bound, bound)
    x = jax.random.normal(kx, (N, ngf, H, W), jnp.float32)

    out = hnerv_block(x, w_oihw, bias, stride=stride, padding=padding)
    out = jax.block_until_ready(out)
    assert out.shape == (N, new_ngf, H * stride, W * stride), out.shape

    # Reference on bf16-rounded operands (the kernel feeds bf16 to the MXU but keeps
    # f32 accumulation / epilogue), via an independent XLA conv path + exact GELU.
    xq = x.astype(jnp.bfloat16).astype(jnp.float32)
    wq = w_oihw.astype(jnp.bfloat16).astype(jnp.float32)
    ref = hnerv_block_ref(xq, wq, bias, stride=stride, padding=padding)
    max_err = float(jnp.max(jnp.abs(out - ref)))
    assert jnp.allclose(out, ref, rtol=2e-3, atol=2e-3), max_err

    print("KERNEL_OK")
</pallas_src>

<mosaic_0001>
module attributes {stable_mosaic.version = 11 : i64} {
  func.func @kernel(%arg0: i32, %arg1: i32, %arg2: memref<1x18x18x8xbf16, #tpu.memory_space<vmem>>, %arg3: memref<16x72xbf16, #tpu.memory_space<vmem>>, %arg4: memref<16x1xf32, #tpu.memory_space<vmem>>, %arg5: memref<1x1x16x256xf32, #tpu.memory_space<vmem>>, %arg6: memref<16x16x72xbf16, #tpu.memory_space<vmem>>) attributes {dimension_semantics = [#tpu.dimension_semantics<parallel>, #tpu.dimension_semantics<parallel>], iteration_bounds = array<i64: 2, 1>, scalar_prefetch = 0 : i64, scratch_operands = 1 : i64, tpu.core_type = #tpu.core_type<tc>, window_params = [{transform_indices = @transform_0, window_bounds = array<i64: 1, 18, 18, 8>}, {pipeline_mode = #tpu.pipeline_mode<synchronous>, transform_indices = @transform_1, window_bounds = array<i64: 16, 72>}, {pipeline_mode = #tpu.pipeline_mode<synchronous>, transform_indices = @transform_2, window_bounds = array<i64: 16, 1>}, {transform_indices = @transform_3, window_bounds = array<i64: 1, 1, 16, 256>}]} {
    %c16_i32 = arith.constant 16 : i32
    %0 = arith.muli %arg1, %c16_i32 : i32
    %c0_i32 = arith.constant 0 : i32
    %1 = arith.addi %0, %c0_i32 : i32
    %c0 = arith.constant 0 : index
    %2 = arith.index_cast %1 : i32 to index
    %c0_0 = arith.constant 0 : index
    %c0_1 = arith.constant 0 : index
    %3 = vector.load %arg2[%c0, %2, %c0_0, %c0_1] : memref<1x18x18x8xbf16, #tpu.memory_space<vmem>>, vector<1x16x16x8xbf16>
    %4 = vector.shape_cast %3 : vector<1x16x16x8xbf16> to vector<16x16x8xbf16>
    %c0_2 = arith.constant 0 : index
    %c0_3 = arith.constant 0 : index
    %c0_4 = arith.constant 0 : index
    %5 = vector.load %arg6[%c0_2, %c0_3, %c0_4] : memref<16x16x72xbf16, #tpu.memory_space<vmem>>, vector<16x16x8xbf16>
    tpu.vector_store %arg6[%c0_2, %c0_3, %c0_4], %4 {strides = array<i32>} : memref<16x16x72xbf16, #tpu.memory_space<vmem>>, vector<16x16x8xbf16>,
    %c0_i32_5 = arith.constant 0 : i32
    %6 = arith.addi %0, %c0_i32_5 : i32
    %c0_6 = arith.constant 0 : index
    %7 = arith.index_cast %6 : i32 to index
    %c1 = arith.constant 1 : index
    %c0_7 = arith.constant 0 : index
    %8 = vector.load %arg2[%c0_6, %7, %c1, %c0_7] : memref<1x18x18x8xbf16, #tpu.memory_space<vmem>>, vector<1x16x16x8xbf16>
    %9 = vector.shape_cast %8 : vector<1x16x16x8xbf16> to vector<16x16x8xbf16>
    %c0_8 = arith.constant 0 : index
    %c0_9 = arith.constant 0 : index
    %c8 = arith.constant 8 : index
    %10 = vector.load %arg6[%c0_8, %c0_9, %c8] : memref<16x16x72xbf16, #tpu.memory_space<vmem>>, vector<16x16x8xbf16>
    tpu.vector_store %arg6[%c0_8, %c0_9, %c8], %9 {strides = array<i32>} : memref<16x16x72xbf16, #tpu.memory_space<vmem>>, vector<16x16x8xbf16>,
    %c0_i32_10 = arith.constant 0 : i32
    %11 = arith.addi %0, %c0_i32_10 : i32
    %c0_11 = arith.constant 0 : index
    %12 = arith.index_cast %11 : i32 to index
    %c2 = arith.constant 2 : index
    %c0_12 = arith.constant 0 : index
    %13 = vector.load %arg2[%c0_11, %12, %c2, %c0_12] : memref<1x18x18x8xbf16, #tpu.memory_space<vmem>>, vector<1x16x16x8xbf16>
    %14 = vector.shape_cast %13 : vector<1x16x16x8xbf16> to vector<16x16x8xbf16>
    %c0_13 = arith.constant 0 : index
    %c0_14 = arith.constant 0 : index
    %c16 = arith.constant 16 : index
    %15 = vector.load %arg6[%c0_13, %c0_14, %c16] : memref<16x16x72xbf16, #tpu.memory_space<vmem>>, vector<16x16x8xbf16>
    tpu.vector_store %arg6[%c0_13, %c0_14, %c16], %14 {strides = array<i32>} : memref<16x16x72xbf16, #tpu.memory_space<vmem>>, vector<16x16x8xbf16>,
    %c1_i32 = arith.constant 1 : i32
    %16 = arith.addi %0, %c1_i32 : i32
    %c0_15 = arith.constant 0 : index
    %17 = arith.index_cast %16 : i32 to index
    %c0_16 = arith.constant 0 : index
    %c0_17 = arith.constant 0 : index
    %18 = vector.load %arg2[%c0_15, %17, %c0_16, %c0_17] : memref<1x18x18x8xbf16, #tpu.memory_space<vmem>>, vector<1x16x16x8xbf16>
    %19 = vector.shape_cast %18 : vector<1x16x16x8xbf16> to vector<16x16x8xbf16>
    %c0_18 = arith.constant 0 : index
    %c0_19 = arith.constant 0 : index
    %c24 = arith.constant 24 : index
    %20 = vector.load %arg6[%c0_18, %c0_19, %c24] : memref<16x16x72xbf16, #tpu.memory_space<vmem>>, vector<16x16x8xbf16>
    tpu.vector_store %arg6[%c0_18, %c0_19, %c24], %19 {strides = array<i32>} : memref<16x16x72xbf16, #tpu.memory_space<vmem>>, vector<16x16x8xbf16>,
    %c1_i32_20 = arith.constant 1 : i32
    %21 = arith.addi %0, %c1_i32_20 : i32
    %c0_21 = arith.constant 0 : index
    %22 = arith.index_cast %21 : i32 to index
    %c1_22 = arith.constant 1 : index
    %c0_23 = arith.constant 0 : index
    %23 = vector.load %arg2[%c0_21, %22, %c1_22, %c0_23] : memref<1x18x18x8xbf16, #tpu.memory_space<vmem>>, vector<1x16x16x8xbf16>
    %24 = vector.shape_cast %23 : vector<1x16x16x8xbf16> to vector<16x16x8xbf16>
    %c0_24 = arith.constant 0 : index
    %c0_25 = arith.constant 0 : index
    %c32 = arith.constant 32 : index
    %25 = vector.load %arg6[%c0_24, %c0_25, %c32] : memref<16x16x72xbf16, #tpu.memory_space<vmem>>, vector<16x16x8xbf16>
    tpu.vector_store %arg6[%c0_24, %c0_25, %c32], %24 {strides = array<i32>} : memref<16x16x72xbf16, #tpu.memory_space<vmem>>, vector<16x16x8xbf16>,
    %c1_i32_26 = arith.constant 1 : i32
    %26 = arith.addi %0, %c1_i32_26 : i32
    %c0_27 = arith.constant 0 : index
    %27 = arith.index_cast %26 : i32 to index
    %c2_28 = arith.constant 2 : index
    %c0_29 = arith.constant 0 : index
    %28 = vector.load %arg2[%c0_27, %27, %c2_28, %c0_29] : memref<1x18x18x8xbf16, #tpu.memory_space<vmem>>, vector<1x16x16x8xbf16>
    %29 = vector.shape_cast %28 : vector<1x16x16x8xbf16> to vector<16x16x8xbf16>
    %c0_30 = arith.constant 0 : index
    %c0_31 = arith.constant 0 : index
    %c40 = arith.constant 40 : index
    %30 = vector.load %arg6[%c0_30, %c0_31, %c40] : memref<16x16x72xbf16, #tpu.memory_space<vmem>>, vector<16x16x8xbf16>
    tpu.vector_store %arg6[%c0_30, %c0_31, %c40], %29 {strides = array<i32>} : memref<16x16x72xbf16, #tpu.memory_space<vmem>>, vector<16x16x8xbf16>,
    %c2_i32 = arith.constant 2 : i32
    %31 = arith.addi %0, %c2_i32 : i32
    %c0_32 = arith.constant 0 : index
    %32 = arith.index_cast %31 : i32 to index
    %c0_33 = arith.constant 0 : index
    %c0_34 = arith.constant 0 : index
    %33 = vector.load %arg2[%c0_32, %32, %c0_33, %c0_34] : memref<1x18x18x8xbf16, #tpu.memory_space<vmem>>, vector<1x16x16x8xbf16>
    %34 = vector.shape_cast %33 : vector<1x16x16x8xbf16> to vector<16x16x8xbf16>
    %c0_35 = arith.constant 0 : index
    %c0_36 = arith.constant 0 : index
    %c48 = arith.constant 48 : index
    %35 = vector.load %arg6[%c0_35, %c0_36, %c48] : memref<16x16x72xbf16, #tpu.memory_space<vmem>>, vector<16x16x8xbf16>
    tpu.vector_store %arg6[%c0_35, %c0_36, %c48], %34 {strides = array<i32>} : memref<16x16x72xbf16, #tpu.memory_space<vmem>>, vector<16x16x8xbf16>,
    %c2_i32_37 = arith.constant 2 : i32
    %36 = arith.addi %0, %c2_i32_37 : i32
    %c0_38 = arith.constant 0 : index
    %37 = arith.index_cast %36 : i32 to index
    %c1_39 = arith.constant 1 : index
    %c0_40 = arith.constant 0 : index
    %38 = vector.load %arg2[%c0_38, %37, %c1_39, %c0_40] : memref<1x18x18x8xbf16, #tpu.memory_space<vmem>>, vector<1x16x16x8xbf16>
    %39 = vector.shape_cast %38 : vector<1x16x16x8xbf16> to vector<16x16x8xbf16>
    %c0_41 = arith.constant 0 : index
    %c0_42 = arith.constant 0 : index
    %c56 = arith.constant 56 : index
    %40 = vector.load %arg6[%c0_41, %c0_42, %c56] : memref<16x16x72xbf16, #tpu.memory_space<vmem>>, vector<16x16x8xbf16>
    tpu.vector_store %arg6[%c0_41, %c0_42, %c56], %39 {strides = array<i32>} : memref<16x16x72xbf16, #tpu.memory_space<vmem>>, vector<16x16x8xbf16>,
    %c2_i32_43 = arith.constant 2 : i32
    %41 = arith.addi %0, %c2_i32_43 : i32
    %c0_44 = arith.constant 0 : index
    %42 = arith.index_cast %41 : i32 to index
    %c2_45 = arith.constant 2 : index
    %c0_46 = arith.constant 0 : index
    %43 = vector.load %arg2[%c0_44, %42, %c2_45, %c0_46] : memref<1x18x18x8xbf16, #tpu.memory_space<vmem>>, vector<1x16x16x8xbf16>
    %44 = vector.shape_cast %43 : vector<1x16x16x8xbf16> to vector<16x16x8xbf16>
    %c0_47 = arith.constant 0 : index
    %c0_48 = arith.constant 0 : index
    %c64 = arith.constant 64 : index
    %45 = vector.load %arg6[%c0_47, %c0_48, %c64] : memref<16x16x72xbf16, #tpu.memory_space<vmem>>, vector<16x16x8xbf16>
    tpu.vector_store %arg6[%c0_47, %c0_48, %c64], %44 {strides = array<i32>} : memref<16x16x72xbf16, #tpu.memory_space<vmem>>, vector<16x16x8xbf16>,
    %c0_49 = arith.constant 0 : index
    %c0_50 = arith.constant 0 : index
    %c0_51 = arith.constant 0 : index
    %46 = vector.load %arg6[%c0_49, %c0_50, %c0_51] : memref<16x16x72xbf16, #tpu.memory_space<vmem>>, vector<16x16x72xbf16>
    %47 = vector.shape_cast %46 : vector<16x16x72xbf16> to vector<256x72xbf16>
    %c0_52 = arith.constant 0 : index
    %c0_53 = arith.constant 0 : index
    %48 = vector.load %arg3[%c0_52, %c0_53] : memref<16x72xbf16, #tpu.memory_space<vmem>>, vector<16x72xbf16>
    %49 = tpu.transpose %47, [1, 0] : vector<256x72xbf16> -> vector<72x256xbf16>
    %cst = arith.constant dense<0.000000e+00> : vector<16x256xf32>
    %50 = tpu.matmul %48, %49, %cst {dimension_numbers = #tpu.dot_dimension_numbers<[1], [0], [0], [1], [0, 0, 1, 1], [], []>} : vector<16x72xbf16>, vector<72x256xbf16>, vector<16x256xf32> -> vector<16x256xf32>
    %c0_54 = arith.constant 0 : index
    %c0_55 = arith.constant 0 : index
    %51 = vector.load %arg4[%c0_54, %c0_55] : memref<16x1xf32, #tpu.memory_space<vmem>>, vector<16x1xf32>
    %52 = vector.broadcast %51 : vector<16x1xf32> to vector<16x256xf32>
    %53 = arith.addf %50, %52 : vector<16x256xf32>
    %cst_56 = arith.constant 5.000000e-01 : f32
    %54 = vector.broadcast %cst_56 : f32 to vector<16x256xf32>
    %55 = arith.mulf %54, %53 : vector<16x256xf32>
    %cst_57 = arith.constant 0.707106769 : f32
    %56 = vector.broadcast %cst_57 : f32 to vector<16x256xf32>
    %57 = arith.mulf %53, %56 : vector<16x256xf32>
    %58 = math.absf %57 : vector<16x256xf32>
    %cst_58 = arith.constant 0.327591091 : f32
    %59 = vector.broadcast %cst_58 : f32 to vector<16x256xf32>
    %60 = arith.mulf %59, %58 : vector<16x256xf32>
    %cst_59 = arith.constant 1.000000e+00 : f32
    %61 = vector.broadcast %cst_59 : f32 to vector<16x256xf32>
    %62 = arith.addf %61, %60 : vector<16x256xf32>
    %cst_60 = arith.constant 1.000000e+00 : f32
    %63 = vector.broadcast %cst_60 : f32 to vector<16x256xf32>
    %64 = arith.divf %63, %62 : vector<16x256xf32>
    %cst_61 = arith.constant 1.06140542 : f32
    %65 = vector.broadcast %cst_61 : f32 to vector<16x256xf32>
    %66 = arith.mulf %65, %64 : vector<16x256xf32>
    %cst_62 = arith.constant -1.45315206 : f32
    %67 = vector.broadcast %cst_62 : f32 to vector<16x256xf32>
    %68 = arith.addf %66, %67 : vector<16x256xf32>
    %69 = arith.mulf %68, %64 : vector<16x256xf32>
    %cst_63 = arith.constant 1.42141378 : f32
    %70 = vector.broadcast %cst_63 : f32 to vector<16x256xf32>
    %71 = arith.addf %69, %70 : vector<16x256xf32>
    %72 = arith.mulf %71, %64 : vector<16x256xf32>
    %cst_64 = arith.constant -0.284496725 : f32
    %73 = vector.broadcast %cst_64 : f32 to vector<16x256xf32>
    %74 = arith.addf %72, %73 : vector<16x256xf32>
    %75 = arith.mulf %74, %64 : vector<16x256xf32>
    %cst_65 = arith.constant 0.254829586 : f32
    %76 = vector.broadcast %cst_65 : f32 to vector<16x256xf32>
    %77 = arith.addf %75, %76 : vector<16x256xf32>
    %78 = arith.mulf %77, %64 : vector<16x256xf32>
    %cst_66 = arith.constant 0.000000e+00 : f32
    %79 = vector.broadcast %cst_66 : f32 to vector<16x256xf32>
    %80 = arith.subf %79, %58 : vector<16x256xf32>
    %81 = arith.mulf %80, %58 : vector<16x256xf32>
    %82 = math.exp %81 : vector<16x256xf32>
    %83 = arith.mulf %78, %82 : vector<16x256xf32>
    %cst_67 = arith.constant 1.000000e+00 : f32
    %84 = vector.broadcast %cst_67 : f32 to vector<16x256xf32>
    %85 = arith.subf %84, %83 : vector<16x256xf32>
    %cst_68 = arith.constant 0.000000e+00 : f32
    %86 = vector.broadcast %cst_68 : f32 to vector<16x256xf32>
    %87 = arith.cmpf oge, %57, %86 : vector<16x256xf32>
    %cst_69 = arith.constant 0.000000e+00 : f32
    %88 = vector.broadcast %cst_69 : f32 to vector<16x256xf32>
    %89 = arith.subf %88, %85 : vector<16x256xf32>
    %90 = arith.select %87, %85, %89 : vector<16x256xi1>, vector<16x256xf32>
    %cst_70 = arith.constant 1.000000e+00 : f32
    %91 = vector.broadcast %cst_70 : f32 to vector<16x256xf32>
    %92 = arith.addf %91, %90 : vector<16x256xf32>
    %93 = arith.mulf %55, %92 : vector<16x256xf32>
    %c0_71 = arith.constant 0 : index
    %c0_72 = arith.constant 0 : index
    %c0_73 = arith.constant 0 : index
    %c0_74 = arith.constant 0 : index
    %94 = vector.load %arg5[%c0_71, %c0_72, %c0_73, %c0_74] : memref<1x1x16x256xf32, #tpu.memory_space<vmem>>, vector<1x1x16x256xf32>
    %95 = vector.shape_cast %94 : vector<1x1x16x256xf32> to vector<16x256xf32>
    %96 = vector.shape_cast %93 : vector<16x256xf32> to vector<1x1x16x256xf32>
    tpu.vector_store %arg5[%c0_71, %c0_72, %c0_73, %c0_74], %96 {strides = array<i32>} : memref<1x1x16x256xf32, #tpu.memory_space<vmem>>, vector<1x1x16x256xf32>,
    return
  }
  func.func @transform_0(%arg0: i32, %arg1: i32) -> (i32, i32, i32, i32) {
    %c0_i32 = arith.constant 0 : i32
    %c0_i32_0 = arith.constant 0 : i32
    %c0_i32_1 = arith.constant 0 : i32
    %c0_i32_2 = arith.constant 0 : i32
    return %arg0, %c0_i32, %c0_i32_0, %c0_i32_1 : i32, i32, i32, i32
  }
  func.func @transform_1(%arg0: i32, %arg1: i32) -> (i32, i32) {
    %c0_i32 = arith.constant 0 : i32
    %c0_i32_0 = arith.constant 0 : i32
    %c0_i32_1 = arith.constant 0 : i32
    return %c0_i32, %c0_i32_0 : i32, i32
  }
  func.func @transform_2(%arg0: i32, %arg1: i32) -> (i32, i32) {
    %c0_i32 = arith.constant 0 : i32
    %c0_i32_0 = arith.constant 0 : i32
    %c0_i32_1 = arith.constant 0 : i32
    return %c0_i32, %c0_i32_0 : i32, i32
  }
  func.func @transform_3(%arg0: i32, %arg1: i32) -> (i32, i32, i32, i32) {
    %c0_i32 = arith.constant 0 : i32
    %c0_i32_0 = arith.constant 0 : i32
    %c0_i32_1 = arith.constant 0 : i32
    return %arg0, %arg1, %c0_i32, %c0_i32_0 : i32, i32, i32, i32
  }
}

</mosaic_0001>

<bundles_post_ra>
// kernel: hnerv_block.1
= control target key start
LH: loop header
LB: loop body
LE: loop exit
PB: predicated region body
PF: predicated region fallthrough
CT: control target
= control target key end

     0   :  { %s4089_s12 = smov 0   ;;  %s4091_s13 = smov 0   ;;  %s4805_s0 = inlined_call_operand.vmem [shape: bf16[2,18,18,8], index: 0, kind: input, shape index: {}]   ;;  %s4806_s1 = inlined_call_operand.vmem [shape: bf16[16,72], index: 1, kind: input, shape index: {}]   ;;  %s4807_s2 = inlined_call_operand.vmem [shape: f32[16,1], index: 2, kind: input, shape index: {}]   ;;  %s4808_s3 = inlined_call_operand.vmem [shape: f32[2,1,16,256], index: 3, kind: output, shape index: {}]  }
   0x1   :  { %s4093_s14 = smov 0  }
   0x2 LB: > { %s25_s15 = sadd.s32 1, %s4054_s13  ;;  %p3212_p0 = scmp.ge.s32.totalorder %s4058_s14, 1  ;;  %s4058_s14 = sphi %s4093_s14, %s13_s14   ;;  %s4054_s13 = sphi %s4091_s13, %s4810_s13   ;;  %s4050_s12 = sphi %s4089_s12, %s4809_s12  }
   0x3   : > { %p27_p1 = scmp.ge.s32.totalorder %s25_s15, 2  ;;  %p151_p2 = scmp.lt.s32.totalorder %s4058_s14, 3 }
   0x5   : > { %s4812_s15 = smov (%p27_p1, %s25_s15), 0  ;;  %p152_p3 = pnand %p3212_p0, %p151_p2 }
   0x6   : > { %p179_p4 = scmp.lt.s32.totalorder (!%p152_p3), %s4050_s12, 1  ;;  %vm953_vm0 = vcmask (!%p152_p3), 1046528   ;;  %s4060_s20 = smov (!%p152_p3), 24   ;;  %vm519_vm1 = vsmask.f32 (!%p152_p3), 7424  ;;  %vm326_vm2 = vcmask (!%p152_p3), 64512  }
   0x7   : > { %155 = sbr.rel (%p152_p3) target bundleno = 670 (0x29e), region = 32  ;;  %s4061_s21 = smov (!%p152_p3), 40   ;;  %vm760_vm3 = vcmask (!%p152_p3), 130112   ;;  %vm1050_vm4 = vcmask (!%p152_p3), 195712   ;;  %vm1231_vm5 = vcmask (!%p152_p3), 261312   ;;  %vm1664_vm6 = vcmask (!%p152_p3), 326912  }
   0x8   : > { %s4062_s22 = smov (!%p152_p3), 16   ;;  %s4063_s23 = smov (!%p152_p3), 8   ;;  %vm1953_vm7 = vcmask (!%p152_p3), 392512   ;;  %vm2134_vm8 = vcmask (!%p152_p3), 458112   ;;  %vm2567_vm9 = vcmask (!%p152_p3), 523712   ;;  %vm2856_vm10 = vcmask (!%p152_p3), 589312  }
   0x9   : > { %s4064_s24 = smov (!%p152_p3), 32   ;;  %s4065_s25 = smov (!%p152_p3), 48   ;;  %vm2908_vm11 = vcmask (!%p152_p3), 588800  }
   0xa   : > { %s4066_s26 = smov (!%p152_p3), 56   ;;  %s4067_s27 = smov (!%p152_p3), 64  }
   0xe   : > { %s4814_s12 = smov (!%p179_p4, %s4050_s12), 1 }
   0xf   : > { %s3743_s16 = smul.u32 216, %s4814_s12  ;;  %s3716_s7 = sshll.u32 %s4814_s12, 5 }
  0x10   : > { %s192_s10 = scalar_lea.vmem %s4808_s3, %s3716_s7 }
  0x11   : > { %s4113_s19 = scalar_lea.vmem %s4805_s0, %s3743_s16 }
  0x12   : > { %v3779_v0 = vld [vmem:[%s4113_s19 + $0x6c] sm:$0xff]   ;;  %v3782_v3 = vld [vmem:[%s4113_s19 + $0x14] ss:$0 sps:$4 sm:$0x11]   ;;  %v3787_v4 = vld [vmem:[%s4113_s19] sm:$0xff]  }
  0x13   : > { %v3780_v1 = vld [vmem:[%s4113_s19 + $0xc] sm:$0xff]   ;;  %1199 = vrot.lane.b32.xlu1 %v3779_v0, %s4060_s20  ;;  %v1858_v6 = vrot.slane %v3782_v3, 1  ;;  %v3783_v7 = vld [vmem:[%s4113_s19] sm:$0xfe]   ;;  %v521_v9 = vshrl.u32 %v3787_v4, 16  ;;  %v523_v13 = vshll.u32 %v3787_v4, 16 }
  0x14   : > { %1183 = vrot.lane.b32.xlu0 %v3780_v1, %s4060_s20  ;;  %v3781_v2 = vld [vmem:[%s4113_s19 + $0xc] sm:$0xfe]   ;;  %v3784_v8 = vld [vmem:[%s4113_s19 + $0x8] ss:$0 sps:$4 sm:$0x11]   ;;  %v954_v11 = vrot.slane %v3783_v7, 1 }
  0x15   : > { %v1857_v5 = vrot.slane %v3781_v2, 1  ;;  %v3785_v12 = vld [vmem:[%s4113_s19 + $0x60] sm:$0xfe]   ;;  %v955_v14 = vrot.slane %v3784_v8, 1  ;;  %v525_v17 = vrot.slane %v523_v13, 1  ;;  %v3793_v31 = vld [vmem:[%s4113_s19 + $0x6c] sm:$0xff]  }
  0x16   : > { %v3786_v15 = vld [vmem:[%s4113_s19 + $0x68] ss:$0 sps:$4 sm:$0x11]   ;;  %v978_v16 = vrot.slane %v3785_v12, 1  ;;  %v3789_v21 = vld [vmem:[%s4113_s19 + $0x6c] sm:$0xfe]  }
  0x17   : > { %v1859_v10 = vsel %vm953_vm0, %v1857_v5, %v1858_v6  ;;  %v956_v18 = vsel %vm953_vm0, %v954_v11, %v955_v14  ;;  %v979_v19 = vrot.slane %v3786_v15, 1  ;;  %v3788_v20 = vld [vmem:[%s4113_s19 + $0x8] ss:$0 sps:$4 sm:$0x11]   ;;  %v526_v23 = vor.u32 %v525_v17, %v521_v9  ;;  %v3791_v27 = vld [vmem:[%s4113_s19 + $0x60] sm:$0xff]   ;;  %v3795_v41 = vld [vmem:[%s4113_s19 + $0xc] sm:$0xff]  }
  0x18   : > { %1905 = vrot.lane.b32.xlu0 %v1859_v10, %s4061_s21  ;;  %1002 = vrot.lane.b32.xlu1 %v956_v18, %s4062_s22  ;;  %v528_v24 = vshll.u32 %v3788_v20, 16  ;;  %v3790_v25 = vld [vmem:[%s4113_s19 + $0x74] ss:$0 sps:$4 sm:$0x11]   ;;  %v1881_v26 = vrot.slane %v3789_v21, 1  ;;  %v617_v32 = vshrl.u32 %v3791_v27, 16 }
  0x19   : > { %v980_v22 = vsel %vm953_vm0, %v978_v16, %v979_v19  ;;  %v1882_v29 = vrot.slane %v3790_v25, 1  ;;  %v3792_v30 = vld [vmem:[%s4113_s19 + $0x68] ss:$0 sps:$4 sm:$0x11]   ;;  %v619_v33 = vshll.u32 %v3791_v27, 16  ;;  %v1521_v39 = vshrl.u32 %v3793_v31, 16 }
  0x1a   : > { %v530_v28 = vrot.slane %v528_v24, 1  ;;  %v624_v36 = vshll.u32 %v3792_v30, 16  ;;  %v3794_v37 = vld [vmem:[%s4113_s19 + $0x74] ss:$0 sps:$4 sm:$0x11]   ;;  %v1523_v40 = vshll.u32 %v3793_v31, 16 }
  0x1b   : > { %v1883_v35 = vsel %vm953_vm0, %v1881_v26, %v1882_v29  ;;  %v621_v38 = vrot.slane %v619_v33, 1  ;;  %v1528_v43 = vshll.u32 %v3794_v37, 16  ;;  %v3796_v46 = vld [vmem:[%s4113_s19 + $0x14] ss:$0 sps:$4 sm:$0x11]   ;;  %v1425_v47 = vshrl.u32 %v3795_v41, 16 }
  0x1c   : > { %1018 = vrot.lane.b32.xlu1 %v980_v22, %s4062_s22  ;;  %v531_v34 = vsel %vm519_vm1, %v526_v23, %v530_v28  ;;  %v626_v42 = vrot.slane %v624_v36, 1  ;;  %v1525_v45 = vrot.slane %v1523_v40, 1  ;;  %v1427_v48 = vshll.u32 %v3795_v41, 16  ;;  %v3797_v54 = vld [vmem:[%s4113_s19 + $0x78] sm:$0xff]   ;;  %v3807_v6 = vld [vmem:[%s4113_s19 + $0x6c] sm:$0xff]  }
  0x1d   : > { %712 = vrot.lane.b32.xlu0 %v531_v34, %s4063_s23  ;;  %v622_v44 = vor.u32 %v621_v38, %v617_v32  ;;  %v1530_v49 = vrot.slane %v1528_v43, 1  ;;  %v1432_v53 = vshll.u32 %v3796_v46, 16  ;;  %v3799_v58 = vld [vmem:[%s4113_s19 + $0x78] sm:$0xff]   ;;  %v3800_v60 = vld [vmem:[%s4113_s19 + $0x80] ss:$0 sps:$4 sm:$0x11]  }
  0x1e   : > { %v1526_v51 = vor.u32 %v1525_v45, %v1521_v39  ;;  %v1429_v52 = vrot.slane %v1427_v48, 1  ;;  %v3798_v59 = vld [vmem:[%s4113_s19 + $0x18] sm:$0xff]   ;;  %v2424_v63 = vshrl.u32 %v3799_v58, 16  ;;  %v2426_v0 = vshll.u32 %v3799_v58, 16  ;;  %v3809_v17 = vld [vmem:[%s4113_s19 + $0xc] sm:$0xff]  }
  0x1f   : > { %v627_v50 = vsel %vm519_vm1, %v622_v44, %v626_v42  ;;  %v1434_v57 = vrot.slane %v1432_v53, 1  ;;  %v3801_v61 = vld [vmem:[%s4113_s19 + $0x18] sm:$0xff]   ;;  %v2431_v1 = vshll.u32 %v3800_v60, 16  ;;  %v3802_v2 = vld [vmem:[%s4113_s19 + $0x20] ss:$0 sps:$4 sm:$0x11]  }
  0x20   : > { %1921 = vrot.lane.b32.xlu1 %v1883_v35, %s4061_s21  ;;  %v1531_v55 = vsel %vm519_vm1, %v1526_v51, %v1530_v49  ;;  %v1430_v56 = vor.u32 %v1429_v52, %v1425_v47  ;;  %v2328_v3 = vshrl.u32 %v3801_v61, 16  ;;  %v2330_v4 = vshll.u32 %v3801_v61, 16  ;;  %v3803_v10 = vld [vmem:[%s4113_s19 + $0x78] sm:$0xfe]   ;;  %v3811_v37 = vld [vmem:[%s4113_s19 + $0x6c] sm:$0xfe]  }
  0x21   : > { %728 = vrot.lane.b32.xlu0 %v627_v50, %s4063_s23  ;;  %v2428_v5 = vrot.slane %v2426_v0, 1  ;;  %v2433_v7 = vrot.slane %v2431_v1, 1  ;;  %v2335_v9 = vshll.u32 %v3802_v2, 16  ;;  %v3804_v12 = vld [vmem:[%s4113_s19 + $0x80] ss:$0 sps:$4 sm:$0x11]  }
  0x22   : > { %v1435_v62 = vsel %vm519_vm1, %v1430_v56, %v1434_v57  ;;  %v2332_v8 = vrot.slane %v2330_v4, 1  ;;  %v629_v13 = vshrl.u32 %v3807_v6, 16  ;;  %v2784_v16 = vrot.slane %v3803_v10, 1  ;;  %v3805_v20 = vld [vmem:[%s4113_s19 + $0x18] sm:$0xfe]  }
  0x23   : > { %v2429_v11 = vor.u32 %v2428_v5, %v2424_v63  ;;  %v2337_v15 = vrot.slane %v2335_v9, 1  ;;  %v2785_v19 = vrot.slane %v3804_v12, 1  ;;  %v3806_v21 = vld [vmem:[%s4113_s19 + $0x20] ss:$0 sps:$4 sm:$0x11]   ;;  %v2760_v24 = vrot.slane %v3805_v20, 1 }
  0x24   : > { %1632 = vrot.lane.b32.xlu1 %v1531_v55, %s4064_s24  ;;  %v2333_v14 = vor.u32 %v2332_v8, %v2328_v3  ;;  %v2761_v25 = vrot.slane %v3806_v21, 1  ;;  %v3808_v26 = vld [vmem:[%s4113_s19 + $0x74] ss:$0 sps:$4 sm:$0x11]   ;;  %v631_v27 = vshll.u32 %v3807_v6, 16  ;;  %v533_v32 = vshrl.u32 %v3809_v17, 16 }
  0x25   : > { %1616 = vrot.lane.b32.xlu0 %v1435_v62, %s4064_s24  ;;  %v2434_v18 = vsel %vm519_vm1, %v2429_v11, %v2433_v7  ;;  %v2786_v23 = vsel %vm953_vm0, %v2784_v16, %v2785_v19  ;;  %v636_v30 = vshll.u32 %v3808_v26, 16  ;;  %v3810_v31 = vld [vmem:[%s4113_s19 + $0x14] ss:$0 sps:$4 sm:$0x11]   ;;  %v535_v33 = vshll.u32 %v3809_v17, 16  ;;  %v3815_v51 = vld [vmem:[%s4113_s19 + $0x78] sm:$0xff]  }
  0x26   : > { %v2338_v22 = vsel %vm519_vm1, %v2333_v14, %v2337_v15  ;;  %v2762_v28 = vsel %vm953_vm0, %v2760_v24, %v2761_v25  ;;  %v633_v29 = vrot.slane %v631_v27, 1  ;;  %v540_v36 = vshll.u32 %v3810_v31, 16  ;;  %v3812_v39 = vld [vmem:[%s4113_s19 + $0x74] ss:$0 sps:$4 sm:$0x11]   ;;  %v3817_v52 = vld [vmem:[%s4113_s19 + $0x78] sm:$0xff]  }
  0x27   : > { %v638_v35 = vrot.slane %v636_v30, 1  ;;  %v537_v38 = vrot.slane %v535_v33, 1  ;;  %v981_v42 = vrot.slane %v3811_v37, 1  ;;  %v982_v44 = vrot.slane %v3812_v39, 1  ;;  %v3813_v45 = vld [vmem:[%s4113_s19 + $0xc] sm:$0xfe]  }
  0x28   : > { %2102 = vrot.lane.b32.xlu1 %v3797_v54, %s4065_s25  ;;  %v634_v34 = vor.u32 %v633_v29, %v629_v13  ;;  %v542_v41 = vrot.slane %v540_v36, 1  ;;  %v3814_v46 = vld [vmem:[%s4113_s19 + $0x14] ss:$0 sps:$4 sm:$0x11]   ;;  %v957_v49 = vrot.slane %v3813_v45, 1  ;;  %v1533_v55 = vshrl.u32 %v3817_v52, 16 }
  0x29   : > { %2086 = vrot.lane.b32.xlu0 %v3798_v59, %s4065_s25  ;;  %v538_v43 = vor.u32 %v537_v38, %v533_v32  ;;  %v983_v48 = vsel %vm953_vm0, %v981_v42, %v982_v44  ;;  %v958_v50 = vrot.slane %v3814_v46, 1  ;;  %v3818_v54 = vld [vmem:[%s4113_s19 + $0x80] ss:$0 sps:$4 sm:$0x11]   ;;  %v1535_v56 = vshll.u32 %v3817_v52, 16  ;;  %v3819_v57 = vld [vmem:[%s4113_s19 + $0x18] sm:$0xff]  }
  0x2a   : > { %v639_v40 = vsel %vm519_vm1, %v634_v34, %v638_v35  ;;  %v3816_v58 = vld [vmem:[%s4113_s19 + $0x18] sm:$0xff]   ;;  %v1540_v60 = vshll.u32 %v3818_v54, 16  ;;  %v3820_v61 = vld [vmem:[%s4113_s19 + $0x20] ss:$0 sps:$4 sm:$0x11]   ;;  %v1437_v62 = vshrl.u32 %v3819_v57, 16 }
  0x2b   : > { %v543_v47 = vsel %vm519_vm1, %v538_v43, %v542_v41  ;;  %v959_v53 = vsel %vm953_vm0, %v957_v49, %v958_v50  ;;  %v1537_v59 = vrot.slane %v1535_v56, 1  ;;  %v1439_v63 = vshll.u32 %v3819_v57, 16  ;;  %v3821_v3 = vld [vmem:[%s4113_s19 + $0x78] sm:$0xfe]   ;;  %v3827_v17 = vld [vmem:[%s4113_s19 + $0x84] sm:$0xff]  }
  0x2c   : > { %2535 = vrot.lane.b32.xlu1 %v2434_v18, %s4066_s26  ;;  %v1542_v1 = vrot.slane %v1540_v60, 1  ;;  %v1444_v2 = vshll.u32 %v3820_v61, 16  ;;  %v3822_v5 = vld [vmem:[%s4113_s19 + $0x80] ss:$0 sps:$4 sm:$0x11]   ;;  %v1884_v8 = vrot.slane %v3821_v3, 1 }
  0x2d   : > { %2519 = vrot.lane.b32.xlu0 %v2338_v22, %s4066_s26  ;;  %v1538_v0 = vor.u32 %v1537_v59, %v1533_v55  ;;  %v1441_v4 = vrot.slane %v1439_v63, 1  ;;  %v1885_v10 = vrot.slane %v3822_v5, 1  ;;  %v3823_v11 = vld [vmem:[%s4113_s19 + $0x18] sm:$0xfe]   ;;  %v3825_v18 = vld [vmem:[%s4113_s19 + $0x84] sm:$0xff]   ;;  %v2436_v20 = vshrl.u32 %v3827_v17, 16 }
  0x2e   : > { %v1446_v7 = vrot.slane %v1444_v2, 1  ;;  %v3824_v12 = vld [vmem:[%s4113_s19 + $0x20] ss:$0 sps:$4 sm:$0x11]   ;;  %v1860_v15 = vrot.slane %v3823_v11, 1  ;;  %v2438_v21 = vshll.u32 %v3827_v17, 16 }
  0x2f   : > { %v1543_v6 = vsel %vm519_vm1, %v1538_v0, %v1542_v1  ;;  %v1442_v9 = vor.u32 %v1441_v4, %v1437_v62  ;;  %v1886_v14 = vsel %vm953_vm0, %v1884_v8, %v1885_v10  ;;  %v1861_v16 = vrot.slane %v3824_v12, 1  ;;  %v3828_v19 = vld [vmem:[%s4113_s19 + $0x8c] ss:$0 sps:$4 sm:$0x11]   ;;  %v3829_v22 = vld [vmem:[%s4113_s19 + $0x24] sm:$0xff]   ;;  %v3835_v34 = vld [vmem:[%s4113_s19 + $0x78] sm:$0xff]  }
  0x30   : > { %2824 = vrot.lane.b32.xlu1 %v2786_v23, %s4067_s27  ;;  %v3826_v24 = vld [vmem:[%s4113_s19 + $0x24] sm:$0xff]   ;;  %v2440_v25 = vrot.slane %v2438_v21, 1  ;;  %v2443_v26 = vshll.u32 %v3828_v19, 16  ;;  %v3830_v27 = vld [vmem:[%s4113_s19 + $0x2c] ss:$0 sps:$4 sm:$0x11]  }
  0x31   : > { %2808 = vrot.lane.b32.xlu0 %v2762_v28, %s4067_s27  ;;  %v1447_v13 = vsel %vm519_vm1, %v1442_v9, %v1446_v7  ;;  %v1862_v23 = vsel %vm953_vm0, %v1860_v15, %v1861_v16  ;;  %v2340_v28 = vshrl.u32 %v3829_v22, 16  ;;  %v2342_v29 = vshll.u32 %v3829_v22, 16  ;;  %v3831_v33 = vld [vmem:[%s4113_s19 + $0x84] sm:$0xfe]   ;;  %v3839_v62 = vld [vmem:[%s4113_s19 + $0x78] sm:$0xfe]  }
  0x32   : > { %v2441_v30 = vor.u32 %v2440_v25, %v2436_v20  ;;  %v2445_v31 = vrot.slane %v2443_v26, 1  ;;  %v2347_v32 = vshll.u32 %v3830_v27, 16  ;;  %v3832_v36 = vld [vmem:[%s4113_s19 + $0x8c] ss:$0 sps:$4 sm:$0x11]   ;;  %v2787_v39 = vrot.slane %v3831_v33, 1 }
  0x33   : > { %v2344_v35 = vrot.slane %v2342_v29, 1  ;;  %v2788_v41 = vrot.slane %v3832_v36, 1  ;;  %v3833_v42 = vld [vmem:[%s4113_s19 + $0x24] sm:$0xfe]   ;;  %v641_v50 = vshrl.u32 %v3835_v34, 16  ;;  %v984_v3 = vrot.slane %v3839_v62, 1 }
  0x34   : > { %730 = vrot.lane.b32.xlu1 %v639_v40, %s4063_s23  ;;  %v2446_v37 = vsel %vm519_vm1, %v2441_v30, %v2445_v31  ;;  %v2349_v38 = vrot.slane %v2347_v32, 1  ;;  %v3834_v43 = vld [vmem:[%s4113_s19 + $0x2c] ss:$0 sps:$4 sm:$0x11]   ;;  %v2763_v45 = vrot.slane %v3833_v42, 1  ;;  %v3845_v7 = vld [vmem:[%s4113_s19 + $0x84] sm:$0xff]  }
  0x35   : > { %714 = vrot.lane.b32.xlu0 %v543_v47, %s4063_s23  ;;  %v2345_v40 = vor.u32 %v2344_v35, %v2340_v28  ;;  %v2764_v46 = vrot.slane %v3834_v43, 1  ;;  %v3836_v47 = vld [vmem:[%s4113_s19 + $0x80] ss:$0 sps:$4 sm:$0x11]   ;;  %v2789_v49 = vsel %vm953_vm0, %v2787_v39, %v2788_v41  ;;  %v3841_v5 = vld [vmem:[%s4113_s19 + $0x18] sm:$0xfe]  }
  0x36   : > { %v648_v52 = vshll.u32 %v3836_v47, 16  ;;  %v3840_v63 = vld [vmem:[%s4113_s19 + $0x80] ss:$0 sps:$4 sm:$0x11]   ;;  %v960_v10 = vrot.slane %v3841_v5, 1  ;;  %v3847_v11 = vld [vmem:[%s4113_s19 + $0x24] sm:$0xff]  }
  0x37   : > { %v2350_v44 = vsel %vm519_vm1, %v2345_v40, %v2349_v38  ;;  %v2765_v57 = vsel %vm953_vm0, %v2763_v45, %v2764_v46  ;;  %v985_v4 = vrot.slane %v3840_v63, 1  ;;  %v1547_v15 = vshll.u32 %v3845_v7, 16  ;;  %v3844_v21 = vld [vmem:[%s4113_s19 + $0x24] sm:$0xff]   ;;  %v3850_v30 = vld [vmem:[%s4113_s19 + $0x8c] ss:$0 sps:$4 sm:$0x11]  }
  0x38   : > { %1020 = vrot.lane.b32.xlu1 %v983_v48, %s4062_s22  ;;  %v3837_v48 = vld [vmem:[%s4113_s19 + $0x18] sm:$0xff]   ;;  %v1449_v16 = vshrl.u32 %v3847_v11, 16  ;;  %v1451_v19 = vshll.u32 %v3847_v11, 16  ;;  %v3849_v29 = vld [vmem:[%s4113_s19 + $0x84] sm:$0xfe]   ;;  %v3855_v31 = vld [vmem:[%s4113_s19 + $0x90] sm:$0xff]  }
  0x39   : > { %1004 = vrot.lane.b32.xlu0 %v959_v53, %s4062_s22  ;;  %v3838_v53 = vld [vmem:[%s4113_s19 + $0x20] ss:$0 sps:$4 sm:$0x11]   ;;  %v545_v55 = vshrl.u32 %v3837_v48, 16  ;;  %v547_v56 = vshll.u32 %v3837_v48, 16  ;;  %v986_v9 = vsel %vm953_vm0, %v984_v3, %v985_v4  ;;  %v1549_v20 = vrot.slane %v1547_v15, 1 }
  0x3a   : > { %v552_v59 = vshll.u32 %v3838_v53, 16  ;;  %v3851_v35 = vld [vmem:[%s4113_s19 + $0x24] sm:$0xfe]   ;;  %v1888_v36 = vrot.slane %v3850_v30, 1  ;;  %v2448_v40 = vshrl.u32 %v3855_v31, 16  ;;  %v2450_v43 = vshll.u32 %v3855_v31, 16 }
  0x3b   : > { %v549_v61 = vrot.slane %v547_v56, 1  ;;  %v1863_v39 = vrot.slane %v3851_v35, 1  ;;  %v3856_v45 = vld [vmem:[%s4113_s19 + $0x98] ss:$0 sps:$4 sm:$0x11]   ;;  %v3857_v48 = vld [vmem:[%s4113_s19 + $0x30] sm:$0xff]  }
  0x3c   : > { %1201 = vrot.lane.b32.xlu1 %v3815_v51, %s4060_s20  ;;  %v643_v51 = vshll.u32 %v3835_v34, 16  ;;  %v554_v0 = vrot.slane %v552_v59, 1  ;;  %v1887_v34 = vrot.slane %v3849_v29, 1  ;;  %v2452_v46 = vrot.slane %v2450_v43, 1  ;;  %v3863_v56 = vld [vmem:[%s4113_s19 + $0x84] sm:$0xff]  }
  0x3d   : > { %1185 = vrot.lane.b32.xlu0 %v3816_v58, %s4060_s20  ;;  %v650_v58 = vrot.slane %v648_v52, 1  ;;  %v550_v2 = vor.u32 %v549_v61, %v545_v55  ;;  %v2455_v52 = vshll.u32 %v3856_v45, 16  ;;  %v2352_v53 = vshrl.u32 %v3857_v48, 16  ;;  %v3860_v59 = vld [vmem:[%s4113_s19 + $0x98] ss:$0 sps:$4 sm:$0x11]  }
  0x3e   : > { %v645_v54 = vrot.slane %v643_v51, 1  ;;  %v1889_v41 = vsel %vm953_vm0, %v1887_v34, %v1888_v36  ;;  %v2453_v51 = vor.u32 %v2452_v46, %v2448_v40  ;;  %v3865_v62 = vld [vmem:[%s4113_s19 + $0x24] sm:$0xff]   ;;  %v3862_v4 = vld [vmem:[%s4113_s19 + $0x38] ss:$0 sps:$4 sm:$0x11]   ;;  %v653_v5 = vshrl.u32 %v3863_v56, 16 }
  0x3f   : > { %v555_v8 = vsel %vm519_vm1, %v550_v2, %v554_v0  ;;  %v3861_v2 = vld [vmem:[%s4113_s19 + $0x30] sm:$0xfe]   ;;  %v557_v15 = vshrl.u32 %v3865_v62, 16  ;;  %v3869_v30 = vld [vmem:[%s4113_s19 + $0x24] sm:$0xfe]  }
  0x40   : > { %1634 = vrot.lane.b32.xlu1 %v1543_v6, %s4064_s24  ;;  %v646_v60 = vor.u32 %v645_v54, %v641_v50  ;;  %v3842_v6 = vld [vmem:[%s4113_s19 + $0x20] ss:$0 sps:$4 sm:$0x11]   ;;  %v3854_v50 = vld [vmem:[%s4113_s19 + $0x30] sm:$0xff]   ;;  %v2354_v54 = vshll.u32 %v3857_v48, 16  ;;  %v963_v34 = vrot.slane %v3869_v30, 1 }
  0x41   : > { %1618 = vrot.lane.b32.xlu0 %v1447_v13, %s4064_s24  ;;  %v961_v12 = vrot.slane %v3842_v6, 1  ;;  %v3843_v13 = vld [vmem:[%s4113_s19 + $0x84] sm:$0xff]   ;;  %v2766_v6 = vrot.slane %v3861_v2, 1  ;;  %v3870_v31 = vld [vmem:[%s4113_s19 + $0x2c] ss:$0 sps:$4 sm:$0x11]  }
  0x42   : > { %v651_v1 = vsel %vm519_vm1, %v646_v60, %v650_v58  ;;  %v3859_v58 = vld [vmem:[%s4113_s19 + $0x90] sm:$0xfe]   ;;  %v2356_v60 = vrot.slane %v2354_v54, 1  ;;  %v964_v35 = vrot.slane %v3870_v31, 1  ;;  %v3883_v54 = vld [vmem:[%s4113_s19 + $0x9c] sm:$0xff]  }
  0x43   : > { %v962_v17 = vsel %vm953_vm0, %v960_v10, %v961_v12  ;;  %v2790_v0 = vrot.slane %v3859_v58, 1  ;;  %v3864_v10 = vld [vmem:[%s4113_s19 + $0x8c] ss:$0 sps:$4 sm:$0x11]   ;;  %v3872_v48 = vld [vmem:[%s4113_s19 + $0x30] sm:$0xff]   ;;  %v2460_v2 = vshrl.u32 %v3883_v54, 16 }
  0x44   : > { %1923 = vrot.lane.b32.xlu1 %v1886_v14, %s4061_s21  ;;  %v1545_v14 = vshrl.u32 %v3845_v7, 16  ;;  %v2357_v3 = vor.u32 %v2356_v60, %v2352_v53  ;;  %v655_v7 = vshll.u32 %v3863_v56, 16  ;;  %v965_v40 = vsel %vm953_vm0, %v963_v34, %v964_v35  ;;  %v3878_v53 = vld [vmem:[%s4113_s19 + $0x98] ss:$0 sps:$4 sm:$0x11]   ;;  %v3893_v30 = vld [vmem:[%s4113_s19 + $0x90] sm:$0xff]  }
  0x45   : > { %1907 = vrot.lane.b32.xlu0 %v1862_v23, %s4061_s21  ;;  %v3848_v23 = vld [vmem:[%s4113_s19 + $0x2c] ss:$0 sps:$4 sm:$0x11]   ;;  %v3879_v60 = vld [vmem:[%s4113_s19 + $0x30] sm:$0xfe]  }
  0x46   : > { %v1550_v25 = vor.u32 %v1549_v20, %v1545_v14  ;;  %v1456_v28 = vshll.u32 %v3848_v23, 16  ;;  %v657_v12 = vrot.slane %v655_v7, 1  ;;  %v3866_v14 = vld [vmem:[%s4113_s19 + $0x2c] ss:$0 sps:$4 sm:$0x11]  }
  0x47   : > { %v3868_v23 = vld [vmem:[%s4113_s19 + $0x8c] ss:$0 sps:$4 sm:$0x11]  }
  0x48   : > { %2104 = vrot.lane.b32.xlu1 %v3825_v18, %s4065_s25  ;;  %v3846_v18 = vld [vmem:[%s4113_s19 + $0x8c] ss:$0 sps:$4 sm:$0x11]   ;;  %v1458_v33 = vrot.slane %v1456_v28, 1  ;;  %v988_v29 = vrot.slane %v3868_v23, 1 }
  0x49   : > { %2088 = vrot.lane.b32.xlu0 %v3826_v24, %s4065_s25  ;;  %v1552_v22 = vshll.u32 %v3846_v18, 16  ;;  %v1453_v24 = vrot.slane %v1451_v19, 1 }
  0x4b   : > { %v1554_v26 = vrot.slane %v1552_v22, 1  ;;  %v1454_v27 = vor.u32 %v1453_v24, %v1449_v16  ;;  %v559_v16 = vshll.u32 %v3865_v62, 16  ;;  %v3867_v22 = vld [vmem:[%s4113_s19 + $0x84] sm:$0xfe]   ;;  %v3873_v24 = vld [vmem:[%s4113_s19 + $0x90] sm:$0xff]  }
  0x4c   : > { %2537 = vrot.lane.b32.xlu1 %v2446_v37, %s4066_s26  ;;  %v3852_v37 = vld [vmem:[%s4113_s19 + $0x2c] ss:$0 sps:$4 sm:$0x11]   ;;  %v987_v28 = vrot.slane %v3867_v22, 1  ;;  %v1557_v36 = vshrl.u32 %v3873_v24, 16 }
  0x4d   : > { %2521 = vrot.lane.b32.xlu0 %v2350_v44, %s4066_s26  ;;  %v1555_v32 = vsel %vm519_vm1, %v1550_v25, %v1554_v26  ;;  %v1459_v38 = vsel %vm519_vm1, %v1454_v27, %v1458_v33  ;;  %v1864_v42 = vrot.slane %v3852_v37, 1  ;;  %v3853_v44 = vld [vmem:[%s4113_s19 + $0x90] sm:$0xff]   ;;  %v561_v20 = vrot.slane %v559_v16, 1  ;;  %v3888_v22 = vld [vmem:[%s4113_s19 + $0x9c] sm:$0xfe]  }
  0x4e   : > { %v989_v33 = vsel %vm953_vm0, %v987_v28, %v988_v29  ;;  %v1559_v37 = vshll.u32 %v3873_v24, 16  ;;  %v2793_v29 = vrot.slane %v3888_v22, 1  ;;  %v3911_v22 = vld [vmem:[%s4113_s19 + $0x6c] sm:$0xff]  }
  0x4f   : > { %v1865_v47 = vsel %vm953_vm0, %v1863_v39, %v1864_v42  ;;  %v562_v26 = vor.u32 %v561_v20, %v557_v15  ;;  %v3875_v39 = vld [vmem:[%s4113_s19 + $0x30] sm:$0xff]   ;;  %v3882_v15 = vld [vmem:[%s4113_s19 + $0x3c] sm:$0xff]   ;;  %336 = vst.msk [vmem:[#allocation2 + $0x48] sm:$0xff] %vm326_vm2, %v3911_v22 }
  0x50   : > { %2826 = vrot.lane.b32.xlu1 %v2789_v49, %s4067_s27  ;;  %v3858_v49 = vld [vmem:[%s4113_s19 + $0x38] ss:$0 sps:$4 sm:$0x11]   ;;  %v1561_v42 = vrot.slane %v1559_v37, 1  ;;  %v1461_v45 = vshrl.u32 %v3875_v39, 16  ;;  %v1463_v46 = vshll.u32 %v3875_v39, 16 }
  0x51   : > { %2810 = vrot.lane.b32.xlu0 %v2765_v57, %s4067_s27  ;;  %v2359_v55 = vshll.u32 %v3858_v49, 16  ;;  %v2457_v57 = vrot.slane %v2455_v52, 1  ;;  %v3877_v52 = vld [vmem:[%s4113_s19 + $0x90] sm:$0xfe]  }
  0x52   : > { %v1890_v58 = vrot.slane %v3877_v52, 1  ;;  %v3894_v39 = vld [vmem:[%s4113_s19 + $0x98] ss:$0 sps:$4 sm:$0x11]  }
  0x53   : > { %v2361_v61 = vrot.slane %v2359_v55, 1  ;;  %v2458_v63 = vsel %vm519_vm1, %v2453_v51, %v2457_v57 }
  0x54   : > { %732 = vrot.lane.b32.xlu1 %v651_v1, %s4063_s23  ;;  %v2791_v1 = vrot.slane %v3860_v59, 1  ;;  %v1891_v59 = vrot.slane %v3878_v53, 1 }
  0x55   : > { %716 = vrot.lane.b32.xlu0 %v555_v8, %s4063_s23  ;;  %v2362_v8 = vsel %vm519_vm1, %v2357_v3, %v2361_v61  ;;  %v3880_v61 = vld [vmem:[%s4113_s19 + $0x38] ss:$0 sps:$4 sm:$0x11]   ;;  %v2462_v3 = vshll.u32 %v3883_v54, 16 }
  0x56   : > { %v2792_v11 = vsel %vm953_vm0, %v2790_v0, %v2791_v1  ;;  %v1867_v0 = vrot.slane %v3880_v61, 1  ;;  %v1892_v1 = vsel %vm953_vm0, %v1890_v58, %v1891_v59 }
  0x58   : > { %1022 = vrot.lane.b32.xlu1 %v986_v9, %s4062_s22  ;;  %v2767_v9 = vrot.slane %v3862_v4, 1  ;;  %v3884_v4 = vld [vmem:[%s4113_s19 + $0xa4] ss:$0 sps:$4 sm:$0x11]  }
  0x59   : > { %1006 = vrot.lane.b32.xlu0 %v962_v17, %s4062_s22  ;;  %v658_v17 = vor.u32 %v657_v12, %v653_v5  ;;  %v3885_v5 = vld [vmem:[%s4113_s19 + $0x3c] sm:$0xff]   ;;  %v3886_v12 = vld [vmem:[%s4113_s19 + $0x44] ss:$0 sps:$4 sm:$0x11]  }
  0x5a   : > { %v2768_v18 = vsel %vm953_vm0, %v2766_v6, %v2767_v9  ;;  %v2464_v9 = vrot.slane %v2462_v3, 1  ;;  %v2371_v20 = vshll.u32 %v3886_v12, 16  ;;  %v3904_v12 = vld [vmem:[%s4113_s19 + $0xa4] ss:$0 sps:$4 sm:$0x11]  }
  0x5c   : > { %1203 = vrot.lane.b32.xlu1 %v3843_v13, %s4060_s20  ;;  %v660_v13 = vshll.u32 %v3864_v10, 16  ;;  %v2465_v16 = vor.u32 %v2464_v9, %v2460_v2  ;;  %v2373_v24 = vrot.slane %v2371_v20, 1  ;;  %v3903_v9 = vld [vmem:[%s4113_s19 + $0x9c] sm:$0xff]  }
  0x5d   : > { %1187 = vrot.lane.b32.xlu0 %v3844_v21, %s4060_s20  ;;  %v564_v21 = vshll.u32 %v3866_v14, 16  ;;  %v2366_v14 = vshll.u32 %v3885_v5, 16 }
  0x5e   : > { %v662_v19 = vrot.slane %v660_v13, 1  ;;  %v2364_v13 = vshrl.u32 %v3885_v5, 16 }
  0x5f   : > { %v566_v27 = vrot.slane %v564_v21, 1  ;;  %v3892_v21 = vld [vmem:[%s4113_s19 + $0x60] sm:$0xff]  }
  0x60   : > { %1636 = vrot.lane.b32.xlu1 %v1555_v32, %s4064_s24  ;;  %v663_v25 = vsel %vm519_vm1, %v658_v17, %v662_v19  ;;  %v3887_v17 = vld [vmem:[%s4113_s19] sm:$0xff]   ;;  %v2368_v19 = vrot.slane %v2366_v14, 1  ;;  %335 = vst.msk [vmem:[#allocation2 + $0x40] sm:$0xff] %vm326_vm2, %v3892_v21  ;;  %v1569_v14 = vshrl.u32 %v3903_v9, 16 }
  0x61   : > { %1620 = vrot.lane.b32.xlu0 %v1459_v38, %s4064_s24  ;;  %v567_v32 = vsel %vm519_vm1, %v562_v26, %v566_v27  ;;  %v3874_v38 = vld [vmem:[%s4113_s19 + $0x98] ss:$0 sps:$4 sm:$0x11]   ;;  %327 = vst.msk [vmem:[#allocation2] sm:$0xff] %vm326_vm2, %v3887_v17 }
  0x62   : > { %v1564_v43 = vshll.u32 %v3874_v38, 16  ;;  %v2369_v23 = vor.u32 %v2368_v19, %v2364_v13  ;;  %v3906_v17 = vld [vmem:[%s4113_s19 + $0x44] ss:$0 sps:$4 sm:$0x11]  }
  0x64   : > { %1925 = vrot.lane.b32.xlu1 %v1889_v41, %s4061_s21  ;;  %v3871_v41 = vld [vmem:[%s4113_s19 + $0x90] sm:$0xff]   ;;  %v1566_v49 = vrot.slane %v1564_v43, 1  ;;  %v2374_v34 = vsel %vm519_vm1, %v2369_v23, %v2373_v24 }
  0x65   : > { %1909 = vrot.lane.b32.xlu0 %v1865_v47, %s4061_s21  ;;  %v1562_v47 = vor.u32 %v1561_v42, %v1557_v36  ;;  %v3895_v42 = vld [vmem:[%s4113_s19 + $0x30] sm:$0xff]  }
  0x67   : > { %v1567_v55 = vsel %vm519_vm1, %v1562_v47, %v1566_v49  ;;  %v571_v49 = vshll.u32 %v3895_v42, 16 }
  0x68   : > { %2106 = vrot.lane.b32.xlu1 %v3853_v44, %s4065_s25  ;;  %v3876_v44 = vld [vmem:[%s4113_s19 + $0x38] ss:$0 sps:$4 sm:$0x11]  }
  0x69   : > { %2090 = vrot.lane.b32.xlu0 %v3854_v50, %s4065_s25  ;;  %v1465_v50 = vrot.slane %v1463_v46, 1  ;;  %v1468_v51 = vshll.u32 %v3876_v44, 16  ;;  %v3896_v46 = vld [vmem:[%s4113_s19 + $0x38] ss:$0 sps:$4 sm:$0x11]   ;;  %v573_v54 = vrot.slane %v571_v49, 1 }
  0x6a   : > { %v576_v53 = vshll.u32 %v3896_v46, 16  ;;  %v3917_v46 = vld [vmem:[%s4113_s19 + $0x48] sm:$0xff]  }
  0x6b   : > { %v1466_v56 = vor.u32 %v1465_v50, %v1461_v45  ;;  %v1470_v57 = vrot.slane %v1468_v51, 1  ;;  %v672_v45 = vshll.u32 %v3894_v39, 16  ;;  %v3910_v39 = vld [vmem:[%s4113_s19 + $0x44] ss:$0 sps:$4 sm:$0x11]   ;;  %v3914_v49 = vld [vmem:[%s4113_s19 + $0x48] sm:$0xff]  }
  0x6c   : > { %2539 = vrot.lane.b32.xlu1 %v2458_v63, %s4066_s26  ;;  %v1866_v63 = vrot.slane %v3879_v60, 1  ;;  %v578_v58 = vrot.slane %v576_v53, 1 }
  0x6d   : > { %2523 = vrot.lane.b32.xlu0 %v2362_v8, %s4066_s26  ;;  %v1471_v62 = vsel %vm519_vm1, %v1466_v56, %v1470_v57  ;;  %v3881_v8 = vld [vmem:[%s4113_s19 + $0x9c] sm:$0xff]   ;;  %v674_v52 = vrot.slane %v672_v45, 1  ;;  %v3898_v56 = vld [vmem:[%s4113_s19 + $0x98] ss:$0 sps:$4 sm:$0x11]   ;;  %v3913_v45 = vld [vmem:[%s4113_s19 + $0xa8] sm:$0xff]  }
  0x6e   : > { %v1868_v10 = vsel %vm953_vm0, %v1866_v63, %v1867_v0  ;;  %v3899_v63 = vld [vmem:[%s4113_s19 + $0x30] sm:$0xfe]   ;;  %v3900_v0 = vld [vmem:[%s4113_s19 + $0x38] ss:$0 sps:$4 sm:$0x11]  }
  0x6f   : > { %v967_v5 = vrot.slane %v3900_v0, 1 }
  0x70   : > { %2828 = vrot.lane.b32.xlu1 %v2792_v11, %s4067_s27  ;;  %v2467_v11 = vshll.u32 %v3884_v4, 16  ;;  %v966_v4 = vrot.slane %v3899_v63, 1 }
  0x71   : > { %2812 = vrot.lane.b32.xlu0 %v2768_v18, %s4067_s27 }
  0x72   : > { %v2469_v18 = vrot.slane %v2467_v11, 1  ;;  %v3902_v11 = vld [vmem:[%s4113_s19 + $0x3c] sm:$0xff]  }
  0x74   : > { %734 = vrot.lane.b32.xlu1 %v663_v25, %s4063_s23  ;;  %v3889_v25 = vld [vmem:[%s4113_s19 + $0xa4] ss:$0 sps:$4 sm:$0x11]   ;;  %v2470_v28 = vsel %vm519_vm1, %v2465_v16, %v2469_v18  ;;  %v1576_v16 = vshll.u32 %v3904_v12, 16 }
  0x75   : > { %718 = vrot.lane.b32.xlu0 %v567_v32, %s4063_s23  ;;  %v2794_v31 = vrot.slane %v3889_v25, 1  ;;  %v3890_v32 = vld [vmem:[%s4113_s19 + $0x3c] sm:$0xfe]   ;;  %v1480_v25 = vshll.u32 %v3906_v17, 16 }
  0x76   : > { %v2769_v35 = vrot.slane %v3890_v32, 1  ;;  %v1578_v23 = vrot.slane %v1576_v16, 1  ;;  %v3922_v17 = vld [vmem:[%s4113_s19 + $0x50] ss:$0 sps:$4 sm:$0x11]  }
  0x77   : > { %v2795_v38 = vsel %vm953_vm0, %v2793_v29, %v2794_v31  ;;  %v3907_v29 = vld [vmem:[%s4113_s19 + $0x9c] sm:$0xfe]   ;;  %v1482_v32 = vrot.slane %v1480_v25, 1  ;;  %v2773_v22 = vrot.slane %v3922_v17, 1 }
  0x78   : > { %1024 = vrot.lane.b32.xlu1 %v989_v33, %s4062_s22  ;;  %v3891_v33 = vld [vmem:[%s4113_s19 + $0x44] ss:$0 sps:$4 sm:$0x11]  }
  0x79   : > { %1008 = vrot.lane.b32.xlu0 %v965_v40, %s4062_s22  ;;  %v2770_v36 = vrot.slane %v3891_v33, 1  ;;  %v665_v40 = vshrl.u32 %v3893_v30, 16 }
  0x7b   : > { %v2771_v47 = vsel %vm953_vm0, %v2769_v35, %v2770_v36  ;;  %v1893_v35 = vrot.slane %v3907_v29, 1  ;;  %v3926_v29 = vld [vmem:[%s4113_s19 + $0x44] ss:$0 sps:$4 sm:$0x11]  }
  0x7c   : > { %1205 = vrot.lane.b32.xlu1 %v3871_v41, %s4060_s20  ;;  %v667_v41 = vshll.u32 %v3893_v30, 16  ;;  %v3908_v30 = vld [vmem:[%s4113_s19 + $0xa4] ss:$0 sps:$4 sm:$0x11]  }
  0x7d   : > { %1189 = vrot.lane.b32.xlu0 %v3872_v48, %s4060_s20  ;;  %v569_v48 = vshrl.u32 %v3895_v42, 16  ;;  %v1894_v36 = vrot.slane %v3908_v30, 1 }
  0x7e   : > { %v669_v44 = vrot.slane %v667_v41, 1 }
  0x7f   : > { %v574_v60 = vor.u32 %v573_v54, %v569_v48  ;;  %v1895_v41 = vsel %vm953_vm0, %v1893_v35, %v1894_v36  ;;  %v2376_v54 = vshrl.u32 %v3917_v46, 16  ;;  %v588_v35 = vshll.u32 %v3926_v29, 16  ;;  %v3927_v36 = vld [vmem:[%s4113_s19 + $0x9c] sm:$0xfe]   ;;  %v3944_v29 = vld [vmem:[%s4113_s19 + $0x54] sm:$0xff]  }
  0x80   : > { %1638 = vrot.lane.b32.xlu1 %v1567_v55, %s4064_s24  ;;  %v670_v51 = vor.u32 %v669_v44, %v665_v40  ;;  %v3897_v55 = vld [vmem:[%s4113_s19 + $0x90] sm:$0xfe]   ;;  %v1870_v44 = vrot.slane %v3910_v39, 1  ;;  %v3933_v39 = vld [vmem:[%s4113_s19 + $0xa8] sm:$0xff]  }
  0x81   : > { %1622 = vrot.lane.b32.xlu0 %v1471_v62, %s4064_s24  ;;  %v990_v61 = vrot.slane %v3897_v55, 1  ;;  %v991_v62 = vrot.slane %v3898_v56, 1 }
  0x82   : > { %v675_v57 = vsel %vm519_vm1, %v670_v51, %v674_v52  ;;  %v3916_v51 = vld [vmem:[%s4113_s19 + $0xb0] ss:$0 sps:$4 sm:$0x11]  }
  0x83   : > { %v992_v3 = vsel %vm953_vm0, %v990_v61, %v991_v62  ;;  %v2479_v56 = vshll.u32 %v3916_v51, 16 }
  0x84   : > { %1927 = vrot.lane.b32.xlu1 %v1892_v1, %s4061_s21  ;;  %v579_v1 = vsel %vm519_vm1, %v574_v60, %v578_v58  ;;  %v2378_v58 = vshll.u32 %v3917_v46, 16  ;;  %v3929_v46 = vld [vmem:[%s4113_s19 + $0x3c] sm:$0xfe]  }
  0x85   : > { %v4319_v6 = vpop.permute.xlu1 %1199  ;;  %1911 = vrot.lane.b32.xlu0 %v1868_v10, %s4061_s21  ;;  %v968_v10 = vsel %vm953_vm0, %v966_v4, %v967_v5  ;;  %v2481_v63 = vrot.slane %v2479_v56, 1  ;;  %v3923_v4 = vld [vmem:[%s4113_s19 + $0x9c] sm:$0xff]   ;;  %v969_v51 = vrot.slane %v3929_v46, 1  ;;  %v1583_v56 = vshll.u32 %v3933_v39, 16 }
  0x86   : > { %v1184_v7 = vpop.permute.xlu0 %1183  ;;  %v2380_v0 = vrot.slane %v2378_v58, 1  ;;  %v3932_v58 = vld [vmem:[%s4113_s19 + $0x48] sm:$0xff]   ;;  %v3950_v46 = vld [vmem:[%s4113_s19 + $0xbc] ss:$0 sps:$4 sm:$0x11]  }
  0x88   : > { %2108 = vrot.lane.b32.xlu1 %v3881_v8, %s4065_s25 }
  0x89   : > { %2092 = vrot.lane.b32.xlu0 %v3882_v15, %s4065_s25  ;;  %v1571_v15 = vshll.u32 %v3903_v9, 16 }
  0x8a   : > { %v4334_v26 = vpop.permute.xlu0 %1905  ;;  %v1003_v27 = vpop.permute.xlu1 %1002 }
  0x8b   : > { %v1573_v21 = vrot.slane %v1571_v15, 1 }
  0x8c   : > { %2541 = vrot.lane.b32.xlu1 %v2470_v28, %s4066_s26 }
  0x8d   : > { %2525 = vrot.lane.b32.xlu0 %v2374_v34, %s4066_s26  ;;  %v1574_v28 = vor.u32 %v1573_v21, %v1569_v14  ;;  %v3921_v14 = vld [vmem:[%s4113_s19 + $0x48] sm:$0xfe]   ;;  %v679_v21 = vshll.u32 %v3923_v4, 16 }
  0x8e   : > { %v1019_v37 = vpop.permute.xlu1 %1018 }
  0x8f   : > { %v713_v43 = vpop.permute.xlu0 %712  ;;  %v1579_v34 = vsel %vm519_vm1, %v1574_v28, %v1578_v23  ;;  %v3924_v23 = vld [vmem:[%s4113_s19 + $0xa4] ss:$0 sps:$4 sm:$0x11]   ;;  %v681_v25 = vrot.slane %v679_v21, 1 }
  0x90   : > { %761 = vst.msk [vmem:[#allocation2] sm:$0xff] %vm760_vm3, %v713_v43  ;;  %2830 = vrot.lane.b32.xlu1 %v2795_v38, %s4067_s27  ;;  %v3915_v43 = vld [vmem:[%s4113_s19 + $0xa8] sm:$0xff]   ;;  %v684_v28 = vshll.u32 %v3924_v23, 16 }
  0x91   : > { %1051 = vst.msk [vmem:[#allocation2] sm:$0xff] %vm1050_vm4, %v1003_v27  ;;  %2814 = vrot.lane.b32.xlu0 %v2771_v47, %s4067_s27  ;;  %v2472_v52 = vshrl.u32 %v3915_v43, 16  ;;  %v2474_v53 = vshll.u32 %v3915_v43, 16 }
  0x92   : > { %v1922_v50 = vpop.permute.xlu1 %1921  ;;  %1232 = vst.msk [vmem:[#allocation2] sm:$0xff] %vm1231_vm5, %v1184_v7  ;;  %v3901_v7 = vld [vmem:[%s4113_s19 + $0x9c] sm:$0xff]  }
  0x93   : > { %v729_v59 = vpop.permute.xlu0 %728  ;;  %v2476_v55 = vrot.slane %v2474_v53, 1  ;;  %v3931_v53 = vld [vmem:[%s4113_s19 + $0xa8] sm:$0xff]  }
  0x94   : > { %736 = vrot.lane.b32.xlu1 %v675_v57, %s4063_s23  ;;  %769 = vst.msk [vmem:[#allocation2 + $0x40] sm:$0xff] %vm760_vm3, %v729_v59  ;;  %v3918_v57 = vld [vmem:[%s4113_s19 + $0x50] ss:$0 sps:$4 sm:$0x11]  }
  0x95   : > { %1059 = vst.msk [vmem:[#allocation2 + $0x40] sm:$0xff] %vm1050_vm4, %v1019_v37  ;;  %720 = vrot.lane.b32.xlu0 %v579_v1, %s4063_s23  ;;  %v3909_v37 = vld [vmem:[%s4113_s19 + $0x3c] sm:$0xfe]   ;;  %v2477_v62 = vor.u32 %v2476_v55, %v2472_v52  ;;  %v2383_v1 = vshll.u32 %v3918_v57, 16  ;;  %v1581_v55 = vshrl.u32 %v3933_v39, 16 }
  0x96   : > { %v1633_v2 = vpop.permute.xlu1 %1632  ;;  %1240 = vst.msk [vmem:[#allocation2 + $0x40] sm:$0xff] %vm1231_vm5, %v4319_v6  ;;  %v3905_v6 = vld [vmem:[%s4113_s19 + $0x3c] sm:$0xff]   ;;  %v1869_v42 = vrot.slane %v3909_v37, 1 }
  0x97   : > { %1673 = vst.msk [vmem:[#allocation2 + $0x40] sm:$0xff] %vm1664_vm6, %v1633_v2  ;;  %v1617_v8 = vpop.permute.xlu0 %1616  ;;  %v1473_v18 = vshrl.u32 %v3905_v6, 16  ;;  %v1475_v19 = vshll.u32 %v3905_v6, 16  ;;  %v3919_v2 = vld [vmem:[%s4113_s19 + $0xa8] sm:$0xfe]   ;;  %v2482_v5 = vsel %vm519_vm1, %v2477_v62, %v2481_v63  ;;  %v3941_v62 = vld [vmem:[%s4113_s19 + $0x78] sm:$0xff]  }
  0x98   : > { %1026 = vrot.lane.b32.xlu1 %v992_v3, %s4062_s22  ;;  %1665 = vst.msk [vmem:[#allocation2] sm:$0xff] %vm1664_vm6, %v1617_v8  ;;  %v1871_v48 = vsel %vm953_vm0, %v1869_v42, %v1870_v44  ;;  %v3920_v3 = vld [vmem:[%s4113_s19 + $0xb0] ss:$0 sps:$4 sm:$0x11]   ;;  %v2385_v8 = vrot.slane %v2383_v1, 1  ;;  %v590_v42 = vrot.slane %v588_v35, 1 }
  0x99   : > { %1962 = vst.msk [vmem:[#allocation2 + $0x40] sm:$0xff] %vm1953_vm7, %v1922_v50  ;;  %1954 = vst.msk [vmem:[#allocation2] sm:$0xff] %vm1953_vm7, %v4334_v26  ;;  %1010 = vrot.lane.b32.xlu0 %v968_v10, %s4062_s22  ;;  %v1477_v24 = vrot.slane %v1475_v19, 1  ;;  %v3912_v26 = vld [vmem:[%s4113_s19 + $0xc] sm:$0xff]   ;;  %v2796_v10 = vrot.slane %v3919_v2, 1  ;;  %v993_v44 = vrot.slane %v3927_v36, 1 }
  0x9a   : > { %v2103_v13 = vpop.permute.xlu1 %2102  ;;  %328 = vst.msk [vmem:[#allocation2 + $0x8] sm:$0xff] %vm326_vm2, %v3912_v26  ;;  %v3936_v1 = vld [vmem:[%s4113_s19 + $0x50] ss:$0 sps:$4 sm:$0x11]   ;;  %337 = vst.msk [vmem:[#allocation2 + $0x50] sm:$0xff] %vm326_vm2, %v3941_v62  ;;  %v3947_v36 = vld [vmem:[%s4113_s19 + $0x54] sm:$0xff]  }
  0x9b   : > { %2143 = vst.msk [vmem:[#allocation2 + $0x40] sm:$0xff] %vm2134_vm8, %v2103_v13  ;;  %v2087_v20 = vpop.permute.xlu0 %2086  ;;  %v1478_v31 = vor.u32 %v1477_v24, %v1473_v18  ;;  %v2797_v13 = vrot.slane %v3920_v3, 1  ;;  %v677_v18 = vshrl.u32 %v3923_v4, 16  ;;  %v3948_v39 = vld [vmem:[%s4113_s19 + $0x5c] ss:$0 sps:$4 sm:$0x11]  }
  0x9c   : > { %1207 = vrot.lane.b32.xlu1 %v3901_v7, %s4060_s20  ;;  %2135 = vst.msk [vmem:[#allocation2] sm:$0xff] %vm2134_vm8, %v2087_v20  ;;  %v2381_v7 = vor.u32 %v2380_v0, %v2376_v54  ;;  %v2772_v20 = vrot.slane %v3921_v14, 1 }
  0x9d   : > { %1191 = vrot.lane.b32.xlu0 %v3902_v11, %s4060_s20  ;;  %v1483_v38 = vsel %vm519_vm1, %v1478_v31, %v1482_v32  ;;  %v3925_v11 = vld [vmem:[%s4113_s19 + $0x3c] sm:$0xff]   ;;  %v2798_v19 = vsel %vm953_vm0, %v2796_v10, %v2797_v13  ;;  %v682_v32 = vor.u32 %v681_v25, %v677_v18  ;;  %v3937_v10 = vld [vmem:[%s4113_s19 + $0xa8] sm:$0xfe]  }
  0x9e   : > { %v2536_v27 = vpop.permute.xlu1 %2535  ;;  %v2386_v15 = vsel %vm519_vm1, %v2381_v7, %v2385_v8  ;;  %v2774_v26 = vsel %vm953_vm0, %v2772_v20, %v2773_v22  ;;  %v581_v30 = vshrl.u32 %v3925_v11, 16  ;;  %v583_v31 = vshll.u32 %v3925_v11, 16  ;;  %v3942_v11 = vld [vmem:[%s4113_s19 + $0x18] sm:$0xff]   ;;  %v3940_v20 = vld [vmem:[%s4113_s19 + $0x50] ss:$0 sps:$4 sm:$0x11]  }
  0x9f   : > { %2576 = vst.msk [vmem:[#allocation2 + $0x40] sm:$0xff] %vm2567_vm9, %v2536_v27  ;;  %v2520_v33 = vpop.permute.xlu0 %2519 }
  0xa0   : > { %2568 = vst.msk [vmem:[#allocation2] sm:$0xff] %vm2567_vm9, %v2520_v33  ;;  %1640 = vrot.lane.b32.xlu1 %v1579_v34, %s4064_s24  ;;  %v686_v33 = vrot.slane %v684_v28, 1  ;;  %v585_v34 = vrot.slane %v583_v31, 1  ;;  %v3943_v28 = vld [vmem:[%s4113_s19 + $0xb4] sm:$0xff]  }
  0xa1   : > { %1624 = vrot.lane.b32.xlu0 %v1483_v38, %s4064_s24  ;;  %v3928_v38 = vld [vmem:[%s4113_s19 + $0xa4] ss:$0 sps:$4 sm:$0x11]   ;;  %329 = vst.msk [vmem:[#allocation2 + $0x10] sm:$0xff] %vm326_vm2, %v3942_v11 }
  0xa2   : > { %v2825_v40 = vpop.permute.xlu1 %2824  ;;  %v3946_v31 = vld [vmem:[%s4113_s19 + $0xbc] ss:$0 sps:$4 sm:$0x11]  }
  0xa3   : > { %2865 = vst.msk [vmem:[#allocation2 + $0x40] sm:$0xff] %vm2856_vm10, %v2825_v40  ;;  %v2809_v47 = vpop.permute.xlu0 %2808  ;;  %v687_v40 = vsel %vm519_vm1, %v682_v32, %v686_v33  ;;  %v2491_v35 = vshll.u32 %v3946_v31, 16 }
  0xa4   : > { %2857 = vst.msk [vmem:[#allocation2] sm:$0xff] %vm2856_vm10, %v2809_v47  ;;  %1929 = vrot.lane.b32.xlu1 %v1895_v41, %s4061_s21  ;;  %v586_v41 = vor.u32 %v585_v34, %v581_v30  ;;  %v3930_v47 = vld [vmem:[%s4113_s19 + $0x44] ss:$0 sps:$4 sm:$0x11]   ;;  %v3945_v30 = vld [vmem:[%s4113_s19 + $0xb4] sm:$0xff]  }
  0xa5   : > { %1913 = vrot.lane.b32.xlu0 %v1871_v48, %s4061_s21  ;;  %v970_v52 = vrot.slane %v3930_v47, 1  ;;  %v2484_v33 = vshrl.u32 %v3945_v30, 16  ;;  %v2486_v34 = vshll.u32 %v3945_v30, 16 }
  0xa6   : > { %v731_v50 = vpop.permute.xlu1 %730  ;;  %v591_v48 = vsel %vm519_vm1, %v586_v41, %v590_v42  ;;  %v2493_v41 = vrot.slane %v2491_v35, 1  ;;  %v2388_v42 = vshrl.u32 %v3947_v36, 16 }
  0xa7   : > { %770 = vst.msk [vmem:[#allocation2 + $0x48] sm:$0xff] %vm760_vm3, %v731_v50  ;;  %v715_v59 = vpop.permute.xlu0 %714  ;;  %v971_v57 = vsel %vm953_vm0, %v969_v51, %v970_v52 }
  0xa8   : > { %2110 = vrot.lane.b32.xlu1 %v3913_v45, %s4065_s25  ;;  %762 = vst.msk [vmem:[#allocation2 + $0x8] sm:$0xff] %vm760_vm3, %v715_v59  ;;  %v994_v45 = vrot.slane %v3928_v38, 1  ;;  %v3934_v59 = vld [vmem:[%s4113_s19 + $0xb0] ss:$0 sps:$4 sm:$0x11]  }
  0xa9   : > { %2094 = vrot.lane.b32.xlu0 %v3914_v49, %s4065_s25  ;;  %v1588_v0 = vshll.u32 %v3934_v59, 16  ;;  %v3952_v59 = vld [vmem:[%s4113_s19 + $0x5c] ss:$0 sps:$4 sm:$0x11]  }
  0xaa   : > { %v1021_v60 = vpop.permute.xlu1 %1020  ;;  %v2881_v61 = vld [vmem:[#allocation2 + $0x40] sm:$0xff]  ;;  %v995_v50 = vsel %vm953_vm0, %v993_v44, %v994_v45  ;;  %v2395_v44 = vshll.u32 %v3948_v39, 16  ;;  %v3949_v45 = vld [vmem:[%s4113_s19 + $0xb4] sm:$0xfe]  }
  0xab   : > { %1060 = vst.msk [vmem:[#allocation2 + $0x48] sm:$0xff] %vm1050_vm4, %v1021_v60  ;;  %3735 = vmatprep.subr.msk.bf16.mxu0 %vm2908_vm11, %v2881_v61  ;;  %v2873_v9 = vld [vmem:[#allocation2] sm:$0xff]  ;;  %v1005_v12 = vpop.permute.xlu0 %1004  ;;  %v3935_v60 = vld [vmem:[%s4113_s19 + $0x48] sm:$0xff]   ;;  %v1585_v61 = vrot.slane %v1583_v56, 1  ;;  %v1590_v7 = vrot.slane %v1588_v0, 1 }
  0xac   : > { %2543 = vrot.lane.b32.xlu1 %v2482_v5, %s4066_s26  ;;  %v2913_v6 = vsel %vm2908_vm11, %v2873_v9, 0  ;;  %1052 = vst.msk [vmem:[#allocation2 + $0x8] sm:$0xff] %vm1050_vm4, %v1005_v12  ;;  %v1485_v2 = vshrl.u32 %v3935_v60, 16  ;;  %v1487_v3 = vshll.u32 %v3935_v60, 16  ;;  %v1492_v9 = vshll.u32 %v3936_v1, 16  ;;  %v3953_v60 = vld [vmem:[%s4113_s19 + $0xa8] sm:$0xff]  }
  0xad   : > { %3718 = vmatpush3.bf16.xpose.msra.mxu0 %v2913_v6  ;;  %2527 = vrot.lane.b32.xlu0 %v2386_v15, %s4066_s26  ;;  %v1586_v5 = vor.u32 %v1585_v61, %v1581_v55  ;;  %v3938_v12 = vld [vmem:[%s4113_s19 + $0xb0] ss:$0 sps:$4 sm:$0x11]   ;;  %v2397_v51 = vrot.slane %v2395_v44, 1  ;;  %v2800_v55 = vrot.slane %v3950_v46, 1  ;;  %v2776_v1 = vrot.slane %v3952_v59, 1 }
  0xae   : > { %v1202_v16 = vpop.permute.xlu1 %1201  ;;  %v1489_v8 = vrot.slane %v1487_v3, 1  ;;  %v1494_v15 = vrot.slane %v1492_v9, 1  ;;  %v1897_v18 = vrot.slane %v3938_v12, 1  ;;  %v689_v3 = vshrl.u32 %v3953_v60, 16 }
  0xaf   : > { %1241 = vst.msk [vmem:[#allocation2 + $0x48] sm:$0xff] %vm1231_vm5, %v1202_v16  ;;  %v1186_v24 = vpop.permute.xlu0 %1185  ;;  %v1591_v13 = vsel %vm519_vm1, %v1586_v5, %v1590_v7  ;;  %v1896_v16 = vrot.slane %v3937_v10, 1  ;;  %v691_v5 = vshll.u32 %v3953_v60, 16  ;;  %v3955_v7 = vld [vmem:[%s4113_s19 + $0x48] sm:$0xff]  }
  0xb0   : > { %2832 = vrot.lane.b32.xlu1 %v2798_v19, %s4067_s27  ;;  %1233 = vst.msk [vmem:[#allocation2 + $0x8] sm:$0xff] %vm1231_vm5, %v1186_v24  ;;  %v1490_v14 = vor.u32 %v1489_v8, %v1485_v2  ;;  %v3939_v19 = vld [vmem:[%s4113_s19 + $0x48] sm:$0xfe]   ;;  %v1873_v24 = vrot.slane %v3940_v20, 1  ;;  %v593_v12 = vshrl.u32 %v3955_v7, 16 }
  0xb1   : > { %2816 = vrot.lane.b32.xlu0 %v2774_v26, %s4067_s27  ;;  %v1898_v22 = vsel %vm953_vm0, %v1896_v16, %v1897_v18  ;;  %v1872_v23 = vrot.slane %v3939_v19, 1  ;;  %v3954_v2 = vld [vmem:[%s4113_s19 + $0xb0] ss:$0 sps:$4 sm:$0x11]   ;;  %v693_v11 = vrot.slane %v691_v5, 1 }
  0xb2   : > { %v1635_v27 = vpop.permute.xlu1 %1634  ;;  %v1495_v21 = vsel %vm519_vm1, %v1490_v14, %v1494_v15  ;;  %v696_v9 = vshll.u32 %v3954_v2, 16  ;;  %v3956_v10 = vld [vmem:[%s4113_s19 + $0x50] ss:$0 sps:$4 sm:$0x11]   ;;  %v3957_v19 = vld [vmem:[%s4113_s19 + $0xa8] sm:$0xfe]  }
  0xb3   : > { %1674 = vst.msk [vmem:[#allocation2 + $0x48] sm:$0xff] %vm1664_vm6, %v1635_v27  ;;  %v1619_v37 = vpop.permute.xlu0 %1618  ;;  %v1874_v26 = vsel %vm953_vm0, %v1872_v23, %v1873_v24  ;;  %v600_v15 = vshll.u32 %v3956_v10, 16  ;;  %v694_v16 = vor.u32 %v693_v11, %v689_v3  ;;  %v3958_v20 = vld [vmem:[%s4113_s19 + $0xb0] ss:$0 sps:$4 sm:$0x11]   ;;  %v996_v24 = vrot.slane %v3957_v19, 1 }
  0xb4   : > { %1666 = vst.msk [vmem:[#allocation2 + $0x8] sm:$0xff] %vm1664_vm6, %v1619_v37  ;;  %738 = vrot.lane.b32.xlu1 %v687_v40, %s4063_s23  ;;  %v2488_v40 = vrot.slane %v2486_v34, 1  ;;  %v698_v14 = vrot.slane %v696_v9, 1  ;;  %v3965_v34 = vld [vmem:[%s4113_s19 + $0x54] sm:$0xff]   ;;  %v3975_v9 = vld [vmem:[%s4113_s19 + $0xc0] sm:$0xff]  }
  0xb5   : > { %722 = vrot.lane.b32.xlu0 %v591_v48, %s4063_s23  ;;  %v1497_v39 = vshrl.u32 %v3965_v34, 16  ;;  %v1499_v44 = vshll.u32 %v3965_v34, 16  ;;  %v3968_v59 = vld [vmem:[%s4113_s19 + $0xbc] ss:$0 sps:$4 sm:$0x11]   ;;  %v3973_v10 = vld [vmem:[%s4113_s19 + $0xc0] sm:$0xff]  }
  0xb6   : > { %v1924_v43 = vpop.permute.xlu1 %1923  ;;  %v2489_v48 = vor.u32 %v2488_v40, %v2484_v33 }
  0xb7   : > { %1963 = vst.msk [vmem:[#allocation2 + $0x48] sm:$0xff] %vm1953_vm7, %v1924_v43  ;;  %v1908_v49 = vpop.permute.xlu0 %1907  ;;  %v2390_v43 = vshll.u32 %v3947_v36, 16  ;;  %v3961_v36 = vld [vmem:[%s4113_s19 + $0xb4] sm:$0xff]  }
  0xb8   : > { %1955 = vst.msk [vmem:[#allocation2 + $0x8] sm:$0xff] %vm1953_vm7, %v1908_v49  ;;  %1028 = vrot.lane.b32.xlu1 %v995_v50, %s4062_s22  ;;  %v2494_v56 = vsel %vm519_vm1, %v2489_v48, %v2493_v41 }
  0xb9   : > { %1012 = vrot.lane.b32.xlu0 %v971_v57, %s4062_s22  ;;  %v2392_v49 = vrot.slane %v2390_v43, 1  ;;  %v3964_v43 = vld [vmem:[%s4113_s19 + $0xbc] ss:$0 sps:$4 sm:$0x11]  }
  0xba   : > { %v2105_v54 = vpop.permute.xlu1 %2104  ;;  %v1600_v48 = vshll.u32 %v3964_v43, 16  ;;  %v3981_v43 = vld [vmem:[%s4113_s19 + $0x60] sm:$0xfe]  }
  0xbb   : > { %2144 = vst.msk [vmem:[#allocation2 + $0x48] sm:$0xff] %vm2134_vm8, %v2105_v54  ;;  %v2089_v63 = vpop.permute.xlu0 %2088  ;;  %v2799_v54 = vrot.slane %v3949_v45, 1  ;;  %v2393_v57 = vor.u32 %v2392_v49, %v2388_v42  ;;  %v3962_v42 = vld [vmem:[%s4113_s19 + $0x54] sm:$0xff]   ;;  %v3966_v49 = vld [vmem:[%s4113_s19 + $0x5c] ss:$0 sps:$4 sm:$0x11]  }
  0xbc   : > { %2136 = vst.msk [vmem:[#allocation2 + $0x8] sm:$0xff] %vm2134_vm8, %v2089_v63  ;;  %1209 = vrot.lane.b32.xlu1 %v3931_v53, %s4060_s20 }
  0xbd   : > { %1193 = vrot.lane.b32.xlu0 %v3932_v58, %s4060_s20  ;;  %v3951_v58 = vld [vmem:[%s4113_s19 + $0x54] sm:$0xfe]   ;;  %v2801_v61 = vsel %vm953_vm0, %v2799_v54, %v2800_v55  ;;  %v2398_v62 = vsel %vm519_vm1, %v2393_v57, %v2397_v51  ;;  %v3972_v51 = vld [vmem:[%s4113_s19 + $0x24] sm:$0xff]   ;;  %v1602_v54 = vrot.slane %v1600_v48, 1  ;;  %v2778_v48 = vrot.slane %v3981_v43, 1 }
  0xbe   : > { %v2538_v4 = vpop.permute.xlu1 %2537  ;;  %v2775_v0 = vrot.slane %v3951_v58, 1  ;;  %v3967_v57 = vld [vmem:[%s4113_s19 + $0xb4] sm:$0xfe]   ;;  %330 = vst.msk [vmem:[#allocation2 + $0x18] sm:$0xff] %vm326_vm2, %v3972_v51 }
  0xbf   : > { %2577 = vst.msk [vmem:[#allocation2 + $0x48] sm:$0xff] %vm2567_vm9, %v2538_v4  ;;  %v2522_v6 = vpop.permute.xlu0 %2521 }
  0xc0   : > { %2569 = vst.msk [vmem:[#allocation2 + $0x8] sm:$0xff] %vm2567_vm9, %v2522_v6  ;;  %1642 = vrot.lane.b32.xlu1 %v1591_v13, %s4064_s24  ;;  %v2777_v8 = vsel %vm953_vm0, %v2775_v0, %v2776_v1  ;;  %v595_v6 = vshll.u32 %v3955_v7, 16  ;;  %v1900_v0 = vrot.slane %v3968_v59, 1  ;;  %v3970_v1 = vld [vmem:[%s4113_s19 + $0x5c] ss:$0 sps:$4 sm:$0x11]  }
  0xc1   : > { %1626 = vrot.lane.b32.xlu0 %v1495_v21, %s4064_s24  ;;  %v602_v21 = vrot.slane %v600_v15, 1  ;;  %v1876_v7 = vrot.slane %v3970_v1, 1  ;;  %v2498_v15 = vshll.u32 %v3975_v9, 16  ;;  %v3988_v1 = vld [vmem:[%s4113_s19 + $0xbc] ss:$0 sps:$4 sm:$0x11]  }
  0xc2   : > { %v2827_v17 = vpop.permute.xlu1 %2826 }
  0xc3   : > { %2866 = vst.msk [vmem:[#allocation2 + $0x48] sm:$0xff] %vm2856_vm10, %v2827_v17  ;;  %v2811_v25 = vpop.permute.xlu0 %2810  ;;  %v597_v17 = vrot.slane %v595_v6, 1  ;;  %v3974_v6 = vld [vmem:[%s4113_s19 + $0x60] sm:$0xff]   ;;  %v2500_v19 = vrot.slane %v2498_v15, 1 }
  0xc4   : > { %2858 = vst.msk [vmem:[#allocation2 + $0x8] sm:$0xff] %vm2856_vm10, %v2811_v25  ;;  %1931 = vrot.lane.b32.xlu1 %v1898_v22, %s4061_s21  ;;  %v699_v22 = vsel %vm519_vm1, %v694_v16, %v698_v14  ;;  %v997_v25 = vrot.slane %v3958_v20, 1  ;;  %v2496_v14 = vshrl.u32 %v3975_v9, 16  ;;  %v3977_v16 = vld [vmem:[%s4113_s19 + $0x60] sm:$0xff]   ;;  %v3989_v9 = vld [vmem:[%s4113_s19 + $0x54] sm:$0xfe]  }
  0xc5   : > { %1915 = vrot.lane.b32.xlu0 %v1874_v26, %s4061_s21  ;;  %v598_v23 = vor.u32 %v597_v17, %v593_v12  ;;  %v3959_v26 = vld [vmem:[%s4113_s19 + $0x48] sm:$0xfe]   ;;  %v3991_v15 = vld [vmem:[%s4113_s19 + $0xc0] sm:$0xff]  }
  0xc6   : > { %v733_v27 = vpop.permute.xlu1 %732  ;;  %v998_v31 = vsel %vm953_vm0, %v996_v24, %v997_v25  ;;  %v2501_v25 = vor.u32 %v2500_v19, %v2496_v14 }
  0xc7   : > { %771 = vst.msk [vmem:[#allocation2 + $0x50] sm:$0xff] %vm760_vm3, %v733_v27  ;;  %v717_v32 = vpop.permute.xlu0 %716  ;;  %v603_v30 = vsel %vm519_vm1, %v598_v23, %v602_v21  ;;  %v2400_v21 = vshrl.u32 %v3977_v16, 16  ;;  %v3978_v23 = vld [vmem:[%s4113_s19 + $0x68] ss:$0 sps:$4 sm:$0x11]  }
  0xc8   : > { %763 = vst.msk [vmem:[#allocation2 + $0x10] sm:$0xff] %vm760_vm3, %v717_v32  ;;  %2112 = vrot.lane.b32.xlu1 %v3943_v28, %s4065_s25  ;;  %v3960_v28 = vld [vmem:[%s4113_s19 + $0x50] ss:$0 sps:$4 sm:$0x11]   ;;  %v972_v32 = vrot.slane %v3959_v26, 1 }
  0xc9   : > { %2096 = vrot.lane.b32.xlu0 %v3944_v29, %s4065_s25  ;;  %v3963_v29 = vld [vmem:[%s4113_s19 + $0xb4] sm:$0xff]   ;;  %v973_v35 = vrot.slane %v3960_v28, 1 }
  0xca   : > { %v1023_v37 = vpop.permute.xlu1 %1022  ;;  %v2882_v38 = vld [vmem:[#allocation2 + $0x48] sm:$0xff] }
  0xcb   : > { %1061 = vst.msk [vmem:[#allocation2 + $0x50] sm:$0xff] %vm1050_vm4, %v1023_v37  ;;  %3736 = vmatprep.subr.msk.bf16.mxu0 %vm2908_vm11, %v2882_v38  ;;  %v1007_v47 = vpop.permute.xlu0 %1006  ;;  %v2874_v50 = vld [vmem:[#allocation2 + $0x8] sm:$0xff]  ;;  %v1593_v37 = vshrl.u32 %v3963_v29, 16  ;;  %v1595_v38 = vshll.u32 %v3963_v29, 16  ;;  %v974_v40 = vsel %vm953_vm0, %v972_v32, %v973_v35  ;;  %v3983_v29 = vld [vmem:[%s4113_s19 + $0xb4] sm:$0xff]  }
  0xcc   : > { %1053 = vst.msk [vmem:[#allocation2 + $0x10] sm:$0xff] %vm1050_vm4, %v1007_v47  ;;  %v2916_v52 = vsel %vm2908_vm11, %v2874_v50, 0  ;;  %2545 = vrot.lane.b32.xlu1 %v2494_v56, %s4066_s26  ;;  %v3971_v47 = vld [vmem:[%s4113_s19 + $0x84] sm:$0xff]   ;;  %v1501_v50 = vrot.slane %v1499_v44, 1  ;;  %v1504_v56 = vshll.u32 %v3966_v49, 16  ;;  %v703_v51 = vshll.u32 %v3983_v29, 16 }
  0xcd   : > { %3720 = vmatpush3.bf16.xpose.msra.mxu0 %v2916_v52  ;;  %2529 = vrot.lane.b32.xlu0 %v2398_v62, %s4066_s26  ;;  %v1597_v46 = vrot.slane %v1595_v38, 1  ;;  %338 = vst.msk [vmem:[#allocation2 + $0x58] sm:$0xff] %vm326_vm2, %v3971_v47  ;;  %v1899_v62 = vrot.slane %v3967_v57, 1  ;;  %v3982_v44 = vld [vmem:[%s4113_s19 + $0x68] ss:$0 sps:$4 sm:$0x11]  }
  0xce   : > { %v1204_v53 = vpop.permute.xlu1 %1203  ;;  %v1502_v55 = vor.u32 %v1501_v50, %v1497_v39  ;;  %v2779_v49 = vrot.slane %v3982_v44, 1  ;;  %v3984_v50 = vld [vmem:[%s4113_s19 + $0xbc] ss:$0 sps:$4 sm:$0x11]  }
  0xcf   : > { %1242 = vst.msk [vmem:[#allocation2 + $0x50] sm:$0xff] %vm1231_vm5, %v1204_v53  ;;  %v1188_v63 = vpop.permute.xlu0 %1187  ;;  %v1598_v52 = vor.u32 %v1597_v46, %v1593_v37  ;;  %v1901_v5 = vsel %vm953_vm0, %v1899_v62, %v1900_v0  ;;  %v701_v37 = vshrl.u32 %v3983_v29, 16 }
  0xd0   : > { %1234 = vst.msk [vmem:[#allocation2 + $0x10] sm:$0xff] %vm1231_vm5, %v1188_v63  ;;  %2834 = vrot.lane.b32.xlu1 %v2801_v61, %s4067_s27  ;;  %v1506_v61 = vrot.slane %v1504_v56, 1  ;;  %v3969_v63 = vld [vmem:[%s4113_s19 + $0x54] sm:$0xfe]  }
  0xd1   : > { %2818 = vrot.lane.b32.xlu0 %v2777_v8, %s4067_s27  ;;  %v1603_v60 = vsel %vm519_vm1, %v1598_v52, %v1602_v54  ;;  %v2780_v52 = vsel %vm953_vm0, %v2778_v48, %v2779_v49  ;;  %v705_v54 = vrot.slane %v703_v51, 1  ;;  %v3986_v56 = vld [vmem:[%s4113_s19 + $0x5c] ss:$0 sps:$4 sm:$0x11]  }
  0xd2   : > { %v1637_v4 = vpop.permute.xlu1 %1636  ;;  %v1507_v2 = vsel %vm519_vm1, %v1502_v55, %v1506_v61  ;;  %v708_v55 = vshll.u32 %v3984_v50, 16  ;;  %v612_v62 = vshll.u32 %v3986_v56, 16 }
  0xd3   : > { %1675 = vst.msk [vmem:[#allocation2 + $0x50] sm:$0xff] %vm1664_vm6, %v1637_v4  ;;  %v1621_v13 = vpop.permute.xlu0 %1620  ;;  %v1875_v4 = vrot.slane %v3969_v63, 1  ;;  %v3987_v63 = vld [vmem:[%s4113_s19 + $0xb4] sm:$0xfe]  }
  0xd4   : > { %1667 = vst.msk [vmem:[#allocation2 + $0x10] sm:$0xff] %vm1664_vm6, %v1621_v13  ;;  %740 = vrot.lane.b32.xlu1 %v699_v22, %s4063_s23  ;;  %v3976_v13 = vld [vmem:[%s4113_s19 + $0xc8] ss:$0 sps:$4 sm:$0x11]   ;;  %v2402_v22 = vshll.u32 %v3977_v16, 16  ;;  %v710_v61 = vrot.slane %v708_v55, 1 }
  0xd5   : > { %724 = vrot.lane.b32.xlu0 %v603_v30, %s4063_s23  ;;  %v1877_v11 = vsel %vm953_vm0, %v1875_v4, %v1876_v7  ;;  %v2503_v20 = vshll.u32 %v3976_v13, 16  ;;  %v2407_v30 = vshll.u32 %v3978_v23, 16  ;;  %v975_v13 = vrot.slane %v3989_v9, 1  ;;  %v3993_v16 = vld [vmem:[%s4113_s19 + $0xc0] sm:$0xff]  }
  0xd6   : > { %v1926_v18 = vpop.permute.xlu1 %1925  ;;  %v3995_v23 = vld [vmem:[%s4113_s19 + $0x60] sm:$0xff]  }
  0xd7   : > { %1964 = vst.msk [vmem:[#allocation2 + $0x50] sm:$0xff] %vm1953_vm7, %v1926_v18  ;;  %v1910_v27 = vpop.permute.xlu0 %1909  ;;  %v2505_v26 = vrot.slane %v2503_v20, 1  ;;  %v2409_v38 = vrot.slane %v2407_v30, 1  ;;  %v3994_v20 = vld [vmem:[%s4113_s19 + $0xc8] ss:$0 sps:$4 sm:$0x11]  }
  0xd8   : > { %1956 = vst.msk [vmem:[#allocation2 + $0x10] sm:$0xff] %vm1953_vm7, %v1910_v27  ;;  %1030 = vrot.lane.b32.xlu1 %v998_v31, %s4062_s22  ;;  %v2404_v27 = vrot.slane %v2402_v22, 1  ;;  %v1607_v22 = vshll.u32 %v3993_v16, 16  ;;  %v1511_v30 = vshll.u32 %v3995_v23, 16 }
  0xd9   : > { %1014 = vrot.lane.b32.xlu0 %v974_v40, %s4062_s22  ;;  %v2506_v34 = vsel %vm519_vm1, %v2501_v25, %v2505_v26  ;;  %v3985_v40 = vld [vmem:[%s4113_s19 + $0x54] sm:$0xff]   ;;  %v1612_v26 = vshll.u32 %v3994_v20, 16 }
  0xda   : > { %v2107_v33 = vpop.permute.xlu1 %2106  ;;  %v2405_v35 = vor.u32 %v2404_v27, %v2400_v21  ;;  %v605_v57 = vshrl.u32 %v3985_v40, 16  ;;  %v1605_v21 = vshrl.u32 %v3993_v16, 16  ;;  %v1609_v25 = vrot.slane %v1607_v22, 1  ;;  %v3996_v27 = vld [vmem:[%s4113_s19 + $0x68] ss:$0 sps:$4 sm:$0x11]  }
  0xdb   : > { %2145 = vst.msk [vmem:[#allocation2 + $0x50] sm:$0xff] %vm2134_vm8, %v2107_v33  ;;  %v2091_v41 = vpop.permute.xlu0 %2090  ;;  %v3979_v33 = vld [vmem:[%s4113_s19 + $0xc0] sm:$0xfe]  }
  0xdc   : > { %2137 = vst.msk [vmem:[#allocation2 + $0x10] sm:$0xff] %vm2134_vm8, %v2091_v41  ;;  %1211 = vrot.lane.b32.xlu1 %v3961_v36, %s4060_s20  ;;  %v3980_v36 = vld [vmem:[%s4113_s19 + $0xc8] ss:$0 sps:$4 sm:$0x11]   ;;  %v2802_v39 = vrot.slane %v3979_v33, 1  ;;  %v1614_v33 = vrot.slane %v1612_v26, 1 }
  0xdd   : > { %1195 = vrot.lane.b32.xlu0 %v3962_v42, %s4060_s20  ;;  %v2803_v42 = vrot.slane %v3980_v36, 1  ;;  %v3997_v36 = vld [vmem:[%s4113_s19 + $0xc0] sm:$0xfe]  }
  0xde   : > { %v2540_v45 = vpop.permute.xlu1 %2539 }
  0xdf   : > { %2578 = vst.msk [vmem:[#allocation2 + $0x50] sm:$0xff] %vm2567_vm9, %v2540_v45  ;;  %v2524_v53 = vpop.permute.xlu0 %2523  ;;  %v2410_v45 = vsel %vm519_vm1, %v2405_v35, %v2409_v38  ;;  %v2804_v47 = vsel %vm953_vm0, %v2802_v39, %v2803_v42  ;;  %v3998_v38 = vld [vmem:[%s4113_s19 + $0xc8] ss:$0 sps:$4 sm:$0x11]  }
  0xe0   : > { %2570 = vst.msk [vmem:[#allocation2 + $0x10] sm:$0xff] %vm2567_vm9, %v2524_v53  ;;  %1644 = vrot.lane.b32.xlu1 %v1603_v60, %s4064_s24  ;;  %v706_v60 = vor.u32 %v705_v54, %v701_v37  ;;  %v1513_v37 = vrot.slane %v1511_v30, 1  ;;  %v1903_v44 = vrot.slane %v3998_v38, 1  ;;  %v4003_v54 = vld [vmem:[%s4113_s19 + $0xcc] sm:$0xff]   ;;  %v4683_v38 = vld [vmem:[%s4806_s1] sm:$0xff]  }
  0xe1   : > { %1628 = vrot.lane.b32.xlu0 %v1507_v2, %s4064_s24  ;;  %3733 = vmatprep.mubr.msk.bf16.mxu0 %vm2908_vm11, %v4683_v38 }
  0xe2   : > { %v2829_v58 = vpop.permute.xlu1 %2828  ;;  %v711_v2 = vsel %vm519_vm1, %v706_v60, %v710_v61  ;;  %v4006_v60 = vld [vmem:[%s4113_s19 + $0xd4] ss:$0 sps:$4 sm:$0x11]   ;;  %v4007_v61 = vld [vmem:[%s4113_s19 + $0x6c] sm:$0xff]  }
  0xe3   : > { %2867 = vst.msk [vmem:[#allocation2 + $0x50] sm:$0xff] %vm2856_vm10, %v2829_v58  ;;  %v2813_v3 = vpop.permute.xlu0 %2812  ;;  %v607_v58 = vshll.u32 %v3985_v40, 16 }
  0xe4   : > { %2859 = vst.msk [vmem:[#allocation2 + $0x10] sm:$0xff] %vm2856_vm10, %v2813_v3  ;;  %1933 = vrot.lane.b32.xlu1 %v1901_v5, %s4061_s21  ;;  %v614_v3 = vrot.slane %v612_v62, 1  ;;  %v999_v5 = vrot.slane %v3987_v63, 1 }
  0xe5   : > { %1917 = vrot.lane.b32.xlu0 %v1877_v11, %s4061_s21  ;;  %v609_v0 = vrot.slane %v607_v58, 1  ;;  %v4004_v58 = vld [vmem:[%s4113_s19 + $0x6c] sm:$0xff]  }
  0xe6   : > { %v735_v8 = vpop.permute.xlu1 %734 }
  0xe7   : > { %772 = vst.msk [vmem:[#allocation2 + $0x58] sm:$0xff] %vm760_vm3, %v735_v8  ;;  %v719_v12 = vpop.permute.xlu0 %718  ;;  %v610_v7 = vor.u32 %v609_v0, %v605_v57  ;;  %v1000_v8 = vrot.slane %v3988_v1, 1  ;;  %v2515_v1 = vshll.u32 %v4006_v60, 16 }
  0xe8   : > { %764 = vst.msk [vmem:[#allocation2 + $0x18] sm:$0xff] %vm760_vm3, %v719_v12  ;;  %2114 = vrot.lane.b32.xlu1 %v3973_v10, %s4065_s25  ;;  %v3990_v10 = vld [vmem:[%s4113_s19 + $0x5c] ss:$0 sps:$4 sm:$0x11]  }
  0xe9   : > { %2098 = vrot.lane.b32.xlu0 %v3974_v6, %s4065_s25  ;;  %v615_v12 = vsel %vm519_vm1, %v610_v7, %v614_v3  ;;  %v1001_v6 = vsel %vm953_vm0, %v999_v5, %v1000_v8  ;;  %v976_v14 = vrot.slane %v3990_v10, 1  ;;  %v2412_v3 = vshrl.u32 %v4007_v61, 16  ;;  %v4013_v8 = vld [vmem:[%s4113_s19 + $0x9c] sm:$0xff]  }
  0xea   : > { %v1025_v17 = vpop.permute.xlu1 %1024  ;;  %v2883_v18 = vld [vmem:[#allocation2 + $0x50] sm:$0xff]  ;;  %v2517_v10 = vrot.slane %v2515_v1, 1  ;;  %340 = vst.msk [vmem:[#allocation2 + $0x68] sm:$0xff] %vm326_vm2, %v4013_v8 }
  0xeb   : > { %1062 = vst.msk [vmem:[#allocation2 + $0x58] sm:$0xff] %vm1050_vm4, %v1025_v17  ;;  %3737 = vmatprep.subr.msk.bf16.mxu0 %vm2908_vm11, %v2883_v18  ;;  %v1009_v24 = vpop.permute.xlu0 %1008  ;;  %v2875_v28 = vld [vmem:[#allocation2 + $0x10] sm:$0xff]  ;;  %v977_v18 = vsel %vm953_vm0, %v975_v13, %v976_v14  ;;  %v4014_v14 = vld [vmem:[%s4113_s19 + $0x3c] sm:$0xff]  }
  0xec   : > { %1054 = vst.msk [vmem:[#allocation2 + $0x18] sm:$0xff] %vm1050_vm4, %v1009_v24  ;;  %v2919_v31 = vsel %vm2908_vm11, %v2875_v28, 0  ;;  %2547 = vrot.lane.b32.xlu1 %v2506_v34, %s4066_s26  ;;  %v3992_v24 = vld [vmem:[%s4113_s19 + $0x60] sm:$0xff]   ;;  %v1509_v28 = vshrl.u32 %v3995_v23, 16  ;;  %v1516_v34 = vshll.u32 %v3996_v27, 16 }
  0xed   : > { %3722 = vmatpush3.bf16.xpose.msra.mxu0 %v2919_v31  ;;  %2531 = vrot.lane.b32.xlu0 %v2410_v45, %s4066_s26  ;;  %v4001_v31 = vld [vmem:[%s4113_s19 + $0x90] sm:$0xff]   ;;  %v3999_v45 = vld [vmem:[%s4113_s19 + $0x60] sm:$0xfe]   ;;  %332 = vst.msk [vmem:[#allocation2 + $0x28] sm:$0xff] %vm326_vm2, %v4014_v14 }
  0xee   : > { %v1206_v32 = vpop.permute.xlu1 %1205  ;;  %339 = vst.msk [vmem:[#allocation2 + $0x60] sm:$0xff] %vm326_vm2, %v4001_v31  ;;  %v1518_v40 = vrot.slane %v1516_v34, 1  ;;  %v1514_v42 = vor.u32 %v1513_v37, %v1509_v28  ;;  %v1878_v50 = vrot.slane %v3999_v45, 1  ;;  %v4009_v13 = vld [vmem:[%s4113_s19 + $0xcc] sm:$0xfe]   ;;  %v4018_v37 = vld [vmem:[%s4113_s19 + $0x54] sm:$0xff]  }
  0xef   : > { %1243 = vst.msk [vmem:[#allocation2 + $0x58] sm:$0xff] %vm1231_vm5, %v1206_v32  ;;  %v1190_v41 = vpop.permute.xlu0 %1189  ;;  %v1610_v32 = vor.u32 %v1609_v25, %v1605_v21  ;;  %v2805_v20 = vrot.slane %v4009_v13, 1  ;;  %v4015_v21 = vld [vmem:[%s4113_s19 + $0xa8] sm:$0xff]   ;;  %v4012_v25 = vld [vmem:[%s4113_s19 + $0x74] ss:$0 sps:$4 sm:$0x11]  }
  0xf0   : > { %1235 = vst.msk [vmem:[#allocation2 + $0x18] sm:$0xff] %vm1231_vm5, %v1190_v41  ;;  %2836 = vrot.lane.b32.xlu1 %v2804_v47, %s4067_s27  ;;  %v1902_v41 = vrot.slane %v3997_v36, 1  ;;  %v1519_v48 = vsel %vm519_vm1, %v1514_v42, %v1518_v40  ;;  %v2782_v30 = vrot.slane %v4012_v25, 1  ;;  %v4016_v34 = vld [vmem:[%s4113_s19 + $0x48] sm:$0xff]   ;;  %v2891_v40 = vld [vmem:[%s4807_s2] sm:$0xff] }
  0xf1   : > { %2820 = vrot.lane.b32.xlu0 %v2780_v52, %s4067_s27  ;;  %v1615_v39 = vsel %vm519_vm1, %v1610_v32, %v1614_v33  ;;  %v4002_v52 = vld [vmem:[%s4113_s19 + $0x30] sm:$0xff]   ;;  %341 = vst.msk [vmem:[#allocation2 + $0x70] sm:$0xff] %vm326_vm2, %v4015_v21  ;;  %333 = vst.msk [vmem:[#allocation2 + $0x30] sm:$0xff] %vm326_vm2, %v4016_v34 }
  0xf2   : > { %v1639_v46 = vpop.permute.xlu1 %1638  ;;  %v1904_v49 = vsel %vm953_vm0, %v1902_v41, %v1903_v44  ;;  %331 = vst.msk [vmem:[#allocation2 + $0x20] sm:$0xff] %vm326_vm2, %v4002_v52  ;;  %334 = vst.msk [vmem:[#allocation2 + $0x38] sm:$0xff] %vm326_vm2, %v4018_v37  ;;  %v2892_v41 = vld [vmem:[%s4807_s2 + $0x8] sm:$0xff] }
  0xf3   : > { %1676 = vst.msk [vmem:[#allocation2 + $0x58] sm:$0xff] %vm1664_vm6, %v1639_v46  ;;  %v1623_v53 = vpop.permute.xlu0 %1622  ;;  %v4000_v46 = vld [vmem:[%s4113_s19 + $0x68] ss:$0 sps:$4 sm:$0x11]  }
  0xf4   : > { %1668 = vst.msk [vmem:[#allocation2 + $0x18] sm:$0xff] %vm1664_vm6, %v1623_v53  ;;  %742 = vrot.lane.b32.xlu1 %v711_v2, %s4063_s23  ;;  %v1879_v51 = vrot.slane %v4000_v46, 1  ;;  %v4008_v2 = vld [vmem:[%s4113_s19 + $0x74] ss:$0 sps:$4 sm:$0x11]  }
  0xf5   : > { %726 = vrot.lane.b32.xlu0 %v615_v12, %s4063_s23 }
  0xf6   : > { %v1928_v59 = vpop.permute.xlu1 %1927  ;;  %v1880_v55 = vsel %vm953_vm0, %v1878_v50, %v1879_v51 }
  0xf7   : > { %1965 = vst.msk [vmem:[#allocation2 + $0x58] sm:$0xff] %vm1953_vm7, %v1928_v59  ;;  %v1912_v4 = vpop.permute.xlu0 %1911  ;;  %v4005_v59 = vld [vmem:[%s4113_s19 + $0xcc] sm:$0xff]  }
  0xf8   : > { %1957 = vst.msk [vmem:[#allocation2 + $0x18] sm:$0xff] %vm1953_vm7, %v1912_v4  ;;  %1032 = vrot.lane.b32.xlu1 %v1001_v6, %s4062_s22  ;;  %v2508_v63 = vshrl.u32 %v4005_v59, 16  ;;  %v2510_v0 = vshll.u32 %v4005_v59, 16  ;;  %v2414_v4 = vshll.u32 %v4007_v61, 16 }
  0xf9   : > { %1016 = vrot.lane.b32.xlu0 %v977_v18, %s4062_s22  ;;  %v4010_v18 = vld [vmem:[%s4113_s19 + $0xd4] ss:$0 sps:$4 sm:$0x11]  }
  0xfa   : > { %v2109_v11 = vpop.permute.xlu1 %2108  ;;  %v2512_v9 = vrot.slane %v2510_v0, 1  ;;  %v2416_v6 = vrot.slane %v2414_v4, 1  ;;  %v2806_v23 = vrot.slane %v4010_v18, 1 }
  0xfb   : > { %2146 = vst.msk [vmem:[#allocation2 + $0x58] sm:$0xff] %vm2134_vm8, %v2109_v11  ;;  %v2093_v17 = vpop.permute.xlu0 %2092  ;;  %v2419_v11 = vshll.u32 %v4008_v2, 16 }
  0xfc   : > { %2138 = vst.msk [vmem:[#allocation2 + $0x18] sm:$0xff] %vm2134_vm8, %v2093_v17  ;;  %1213 = vrot.lane.b32.xlu1 %v3991_v15, %s4060_s20  ;;  %v2513_v15 = vor.u32 %v2512_v9, %v2508_v63  ;;  %v2807_v28 = vsel %vm953_vm0, %v2805_v20, %v2806_v23 }
  0xfd   : > { %1197 = vrot.lane.b32.xlu0 %v3992_v24, %s4060_s20  ;;  %v2421_v16 = vrot.slane %v2419_v11, 1  ;;  %v4011_v24 = vld [vmem:[%s4113_s19 + $0x6c] sm:$0xfe]  }
  0xfe   : > { %v2542_v19 = vpop.permute.xlu1 %2541  ;;  %v2518_v22 = vsel %vm519_vm1, %v2513_v15, %v2517_v10 }
  0xff   : > { %2579 = vst.msk [vmem:[#allocation2 + $0x58] sm:$0xff] %vm2567_vm9, %v2542_v19  ;;  %v2526_v29 = vpop.permute.xlu0 %2525  ;;  %v2417_v19 = vor.u32 %v2416_v6, %v2412_v3 }
 0x100   : > { %2571 = vst.msk [vmem:[#allocation2 + $0x18] sm:$0xff] %vm2567_vm9, %v2526_v29  ;;  %1646 = vrot.lane.b32.xlu1 %v1615_v39, %s4064_s24  ;;  %v2781_v29 = vrot.slane %v4011_v24, 1 }
 0x101   : > { %1630 = vrot.lane.b32.xlu0 %v1519_v48, %s4064_s24  ;;  %v2422_v27 = vsel %vm519_vm1, %v2417_v19, %v2421_v16 }
 0x102   : > { %v2831_v35 = vpop.permute.xlu1 %2830  ;;  %v2783_v32 = vsel %vm953_vm0, %v2781_v29, %v2782_v30 }
 0x103   : > { %2868 = vst.msk [vmem:[#allocation2 + $0x58] sm:$0xff] %vm2856_vm10, %v2831_v35  ;;  %v2815_v43 = vpop.permute.xlu0 %2814  ;;  %v4017_v35 = vld [vmem:[%s4113_s19 + $0xb4] sm:$0xff]  }
 0x104   : > { %2860 = vst.msk [vmem:[#allocation2 + $0x18] sm:$0xff] %vm2856_vm10, %v2815_v43  ;;  %1935 = vrot.lane.b32.xlu1 %v1904_v49, %s4061_s21  ;;  %v4068_v43 = vmov 0  }
 0x105   : > { %1919 = vrot.lane.b32.xlu0 %v1880_v55, %s4061_s21  ;;  %342 = vst.msk [vmem:[#allocation2 + $0x78] sm:$0xff] %vm326_vm2, %v4017_v35  ;;  %3778 = vset.pattern.permute.xlu1 %v4068_v43 }
 0x106   : > { %v737_v47 = vpop.permute.xlu1 %736  ;;  %3777 = vset.pattern.permute.xlu0 %v4068_v43 }
 0x107   : > { %773 = vst.msk [vmem:[#allocation2 + $0x60] sm:$0xff] %vm760_vm3, %v737_v47  ;;  %v721_v53 = vpop.permute.xlu0 %720 }
 0x108   : > { %765 = vst.msk [vmem:[#allocation2 + $0x20] sm:$0xff] %vm760_vm3, %v721_v53  ;;  %2116 = vrot.lane.b32.xlu1 %v4003_v54, %s4065_s25 }
 0x109   : > { %2100 = vrot.lane.b32.xlu0 %v4004_v58, %s4065_s25 }
 0x10a   : > { %v1027_v56 = vpop.permute.xlu1 %1026  ;;  %v2884_v57 = vld [vmem:[#allocation2 + $0x58] sm:$0xff] }
 0x10b   : > { %1063 = vst.msk [vmem:[#allocation2 + $0x60] sm:$0xff] %vm1050_vm4, %v1027_v56  ;;  %3738 = vmatprep.subr.msk.bf16.mxu0 %vm2908_vm11, %v2884_v57  ;;  %v1011_v62 = vpop.permute.xlu0 %1010  ;;  %v2876_v5 = vld [vmem:[#allocation2 + $0x18] sm:$0xff] }
 0x10c   : > { %1055 = vst.msk [vmem:[#allocation2 + $0x20] sm:$0xff] %vm1050_vm4, %v1011_v62  ;;  %v2922_v12 = vsel %vm2908_vm11, %v2876_v5, 0  ;;  %2549 = vrot.lane.b32.xlu1 %v2518_v22, %s4066_s26 }
 0x10d   : > { %3724 = vmatpush3.bf16.xpose.msra.mxu0 %v2922_v12  ;;  %2533 = vrot.lane.b32.xlu0 %v2422_v27, %s4066_s26 }
 0x10e   : > { %v1208_v7 = vpop.permute.xlu1 %1207 }
 0x10f   : > { %1244 = vst.msk [vmem:[#allocation2 + $0x60] sm:$0xff] %vm1231_vm5, %v1208_v7  ;;  %v1192_v17 = vpop.permute.xlu0 %1191 }
 0x110   : > { %1236 = vst.msk [vmem:[#allocation2 + $0x20] sm:$0xff] %vm1231_vm5, %v1192_v17  ;;  %2838 = vrot.lane.b32.xlu1 %v2807_v28, %s4067_s27 }
 0x111   : > { %2822 = vrot.lane.b32.xlu0 %v2783_v32, %s4067_s27 }
 0x112   : > { %v1641_v26 = vpop.permute.xlu1 %1640 }
 0x113   : > { %1677 = vst.msk [vmem:[#allocation2 + $0x60] sm:$0xff] %vm1664_vm6, %v1641_v26  ;;  %v1625_v31 = vpop.permute.xlu0 %1624 }
 0x114   : > { %1669 = vst.msk [vmem:[#allocation2 + $0x20] sm:$0xff] %vm1664_vm6, %v1625_v31  ;;  %2900 = vperm.xlu1 %3778, %v2892_v41  }
 0x115   : > { %2895 = vperm.xlu0 %3777, %v2891_v40  }
 0x116   : > { %v1930_v33 = vpop.permute.xlu1 %1929 }
 0x117   : > { %1966 = vst.msk [vmem:[#allocation2 + $0x60] sm:$0xff] %vm1953_vm7, %v1930_v33  ;;  %v1914_v36 = vpop.permute.xlu0 %1913 }
 0x118   : > { %1958 = vst.msk [vmem:[#allocation2 + $0x20] sm:$0xff] %vm1953_vm7, %v1914_v36 }
 0x11a   : > { %v2111_v39 = vpop.permute.xlu1 %2110 }
 0x11b   : > { %2147 = vst.msk [vmem:[#allocation2 + $0x60] sm:$0xff] %vm2134_vm8, %v2111_v39  ;;  %v2095_v42 = vpop.permute.xlu0 %2094 }
 0x11c   : > { %2139 = vst.msk [vmem:[#allocation2 + $0x20] sm:$0xff] %vm2134_vm8, %v2095_v42 }
 0x11e   : > { %v2544_v44 = vpop.permute.xlu1 %2543 }
 0x11f   : > { %2580 = vst.msk [vmem:[#allocation2 + $0x60] sm:$0xff] %vm2567_vm9, %v2544_v44  ;;  %v2528_v45 = vpop.permute.xlu0 %2527 }
 0x120   : > { %2572 = vst.msk [vmem:[#allocation2 + $0x20] sm:$0xff] %vm2567_vm9, %v2528_v45 }
 0x122   : > { %v2833_v46 = vpop.permute.xlu1 %2832 }
 0x123   : > { %2869 = vst.msk [vmem:[#allocation2 + $0x60] sm:$0xff] %vm2856_vm10, %v2833_v46  ;;  %v2817_v47 = vpop.permute.xlu0 %2816 }
 0x124   : > { %2861 = vst.msk [vmem:[#allocation2 + $0x20] sm:$0xff] %vm2856_vm10, %v2817_v47 }
 0x126   : > { %v739_v48 = vpop.permute.xlu1 %738 }
 0x127   : > { %774 = vst.msk [vmem:[#allocation2 + $0x68] sm:$0xff] %vm760_vm3, %v739_v48  ;;  %v723_v49 = vpop.permute.xlu0 %722 }
 0x128   : > { %766 = vst.msk [vmem:[#allocation2 + $0x28] sm:$0xff] %vm760_vm3, %v723_v49 }
 0x12a   : > { %v2885_v50 = vld [vmem:[#allocation2 + $0x60] sm:$0xff]  ;;  %v1029_v51 = vpop.permute.xlu1 %1028 }
 0x12b   : > { %3739 = vmatprep.subr.msk.bf16.mxu0 %vm2908_vm11, %v2885_v50  ;;  %v2877_v52 = vld [vmem:[#allocation2 + $0x20] sm:$0xff]  ;;  %1064 = vst.msk [vmem:[#allocation2 + $0x68] sm:$0xff] %vm1050_vm4, %v1029_v51  ;;  %v1013_v54 = vpop.permute.xlu0 %1012 }
 0x12c   : > { %v2925_v53 = vsel %vm2908_vm11, %v2877_v52, 0  ;;  %1056 = vst.msk [vmem:[#allocation2 + $0x28] sm:$0xff] %vm1050_vm4, %v1013_v54 }
 0x12d   : > { %3726 = vmatpush3.bf16.xpose.msra.mxu0 %v2925_v53 }
 0x12e   : > { %v1210_v55 = vpop.permute.xlu1 %1209 }
 0x12f   : > { %1245 = vst.msk [vmem:[#allocation2 + $0x68] sm:$0xff] %vm1231_vm5, %v1210_v55  ;;  %v1194_v56 = vpop.permute.xlu0 %1193 }
 0x130   : > { %1237 = vst.msk [vmem:[#allocation2 + $0x28] sm:$0xff] %vm1231_vm5, %v1194_v56 }
 0x132   : > { %v1643_v57 = vpop.permute.xlu1 %1642 }
 0x133   : > { %1678 = vst.msk [vmem:[#allocation2 + $0x68] sm:$0xff] %vm1664_vm6, %v1643_v57  ;;  %v1627_v58 = vpop.permute.xlu0 %1626 }
 0x134   : > { %1670 = vst.msk [vmem:[#allocation2 + $0x28] sm:$0xff] %vm1664_vm6, %v1627_v58 }
 0x136   : > { %v1932_v59 = vpop.permute.xlu1 %1931 }
 0x137   : > { %1967 = vst.msk [vmem:[#allocation2 + $0x68] sm:$0xff] %vm1953_vm7, %v1932_v59  ;;  %v1916_v60 = vpop.permute.xlu0 %1915 }
 0x138   : > { %1959 = vst.msk [vmem:[#allocation2 + $0x28] sm:$0xff] %vm1953_vm7, %v1916_v60 }
 0x13a   : > { %v2113_v61 = vpop.permute.xlu1 %2112 }
 0x13b   : > { %2148 = vst.msk [vmem:[#allocation2 + $0x68] sm:$0xff] %vm2134_vm8, %v2113_v61  ;;  %v2097_v62 = vpop.permute.xlu0 %2096 }
 0x13c   : > { %2140 = vst.msk [vmem:[#allocation2 + $0x28] sm:$0xff] %vm2134_vm8, %v2097_v62 }
 0x13e   : > { %v2546_v63 = vpop.permute.xlu1 %2545 }
 0x13f   : > { %2581 = vst.msk [vmem:[#allocation2 + $0x68] sm:$0xff] %vm2567_vm9, %v2546_v63  ;;  %v2530_v0 = vpop.permute.xlu0 %2529 }
 0x140   : > { %2573 = vst.msk [vmem:[#allocation2 + $0x28] sm:$0xff] %vm2567_vm9, %v2530_v0 }
 0x142   : > { %v2835_v1 = vpop.permute.xlu1 %2834 }
 0x143   : > { %2870 = vst.msk [vmem:[#allocation2 + $0x68] sm:$0xff] %vm2856_vm10, %v2835_v1  ;;  %v2819_v2 = vpop.permute.xlu0 %2818 }
 0x144   : > { %2862 = vst.msk [vmem:[#allocation2 + $0x28] sm:$0xff] %vm2856_vm10, %v2819_v2 }
 0x146   : > { %v741_v3 = vpop.permute.xlu1 %740 }
 0x147   : > { %775 = vst.msk [vmem:[#allocation2 + $0x70] sm:$0xff] %vm760_vm3, %v741_v3  ;;  %v725_v4 = vpop.permute.xlu0 %724 }
 0x148   : > { %767 = vst.msk [vmem:[#allocation2 + $0x30] sm:$0xff] %vm760_vm3, %v725_v4 }
 0x14a   : > { %v2886_v5 = vld [vmem:[#allocation2 + $0x68] sm:$0xff]  ;;  %v1031_v7 = vpop.permute.xlu1 %1030 }
 0x14b   : > { %3740 = vmatprep.subr.msk.bf16.mxu0 %vm2908_vm11, %v2886_v5  ;;  %1065 = vst.msk [vmem:[#allocation2 + $0x70] sm:$0xff] %vm1050_vm4, %v1031_v7  ;;  %v2878_v8 = vld [vmem:[#allocation2 + $0x28] sm:$0xff]  ;;  %v1015_v9 = vpop.permute.xlu0 %1014 }
 0x14c   : > { %v2928_v10 = vsel %vm2908_vm11, %v2878_v8, 0  ;;  %1057 = vst.msk [vmem:[#allocation2 + $0x30] sm:$0xff] %vm1050_vm4, %v1015_v9 }
 0x14d   : > { %3728 = vmatpush3.bf16.xpose.msra.mxu0 %v2928_v10 }
 0x14e   : > { %v1212_v11 = vpop.permute.xlu1 %1211 }
 0x14f   : > { %1246 = vst.msk [vmem:[#allocation2 + $0x70] sm:$0xff] %vm1231_vm5, %v1212_v11  ;;  %v1196_v12 = vpop.permute.xlu0 %1195 }
 0x150   : > { %1238 = vst.msk [vmem:[#allocation2 + $0x30] sm:$0xff] %vm1231_vm5, %v1196_v12 }
 0x152   : > { %v1645_v6 = vpop.permute.xlu1 %1644 }
 0x153   : > { %1679 = vst.msk [vmem:[#allocation2 + $0x70] sm:$0xff] %vm1664_vm6, %v1645_v6  ;;  %v1629_v13 = vpop.permute.xlu0 %1628 }
 0x154   : > { %1671 = vst.msk [vmem:[#allocation2 + $0x30] sm:$0xff] %vm1664_vm6, %v1629_v13 }
 0x156   : > { %v1934_v14 = vpop.permute.xlu1 %1933 }
 0x157   : > { %1968 = vst.msk [vmem:[#allocation2 + $0x70] sm:$0xff] %vm1953_vm7, %v1934_v14  ;;  %v1918_v15 = vpop.permute.xlu0 %1917 }
 0x158   : > { %1960 = vst.msk [vmem:[#allocation2 + $0x30] sm:$0xff] %vm1953_vm7, %v1918_v15 }
 0x15a   : > { %v2115_v16 = vpop.permute.xlu1 %2114 }
 0x15b   : > { %2149 = vst.msk [vmem:[#allocation2 + $0x70] sm:$0xff] %vm2134_vm8, %v2115_v16  ;;  %v2099_v17 = vpop.permute.xlu0 %2098 }
 0x15c   : > { %2141 = vst.msk [vmem:[#allocation2 + $0x30] sm:$0xff] %vm2134_vm8, %v2099_v17 }
 0x15e   : > { %v2548_v18 = vpop.permute.xlu1 %2547 }
 0x15f   : > { %2582 = vst.msk [vmem:[#allocation2 + $0x70] sm:$0xff] %vm2567_vm9, %v2548_v18  ;;  %v2532_v19 = vpop.permute.xlu0 %2531 }
 0x160   : > { %2574 = vst.msk [vmem:[#allocation2 + $0x30] sm:$0xff] %vm2567_vm9, %v2532_v19 }
 0x162   : > { %v2837_v20 = vpop.permute.xlu1 %2836 }
 0x163   : > { %2871 = vst.msk [vmem:[#allocation2 + $0x70] sm:$0xff] %vm2856_vm10, %v2837_v20  ;;  %v2821_v21 = vpop.permute.xlu0 %2820 }
 0x164   : > { %2863 = vst.msk [vmem:[#allocation2 + $0x30] sm:$0xff] %vm2856_vm10, %v2821_v21 }
 0x166   : > { %v743_v22 = vpop.permute.xlu1 %742 }
 0x167   : > { %776 = vst.msk [vmem:[#allocation2 + $0x78] sm:$0xff] %vm760_vm3, %v743_v22  ;;  %v727_v23 = vpop.permute.xlu0 %726 }
 0x168   : > { %768 = vst.msk [vmem:[#allocation2 + $0x38] sm:$0xff] %vm760_vm3, %v727_v23 }
 0x16a   : > { %v2887_v24 = vld [vmem:[#allocation2 + $0x70] sm:$0xff]  ;;  %v1033_v25 = vpop.permute.xlu1 %1032 }
 0x16b   : > { %3741 = vmatprep.subr.msk.bf16.mxu0 %vm2908_vm11, %v2887_v24  ;;  %1066 = vst.msk [vmem:[#allocation2 + $0x78] sm:$0xff] %vm1050_vm4, %v1033_v25  ;;  %v2879_v26 = vld [vmem:[#allocation2 + $0x30] sm:$0xff]  ;;  %v1017_v28 = vpop.permute.xlu0 %1016 }
 0x16c   : > { %v2931_v27 = vsel %vm2908_vm11, %v2879_v26, 0  ;;  %1058 = vst.msk [vmem:[#allocation2 + $0x38] sm:$0xff] %vm1050_vm4, %v1017_v28 }
 0x16d   : > { %3730 = vmatpush3.bf16.xpose.msra.mxu0 %v2931_v27 }
 0x16e   : > { %v1214_v29 = vpop.permute.xlu1 %1213 }
 0x16f   : > { %1247 = vst.msk [vmem:[#allocation2 + $0x78] sm:$0xff] %vm1231_vm5, %v1214_v29  ;;  %v1198_v30 = vpop.permute.xlu0 %1197 }
 0x170   : > { %1239 = vst.msk [vmem:[#allocation2 + $0x38] sm:$0xff] %vm1231_vm5, %v1198_v30 }
 0x172   : > { %v1647_v31 = vpop.permute.xlu1 %1646 }
 0x173   : > { %1680 = vst.msk [vmem:[#allocation2 + $0x78] sm:$0xff] %vm1664_vm6, %v1647_v31  ;;  %v1631_v32 = vpop.permute.xlu0 %1630 }
 0x174   : > { %1672 = vst.msk [vmem:[#allocation2 + $0x38] sm:$0xff] %vm1664_vm6, %v1631_v32 }
 0x176   : > { %v1936_v33 = vpop.permute.xlu1 %1935 }
 0x177   : > { %1969 = vst.msk [vmem:[#allocation2 + $0x78] sm:$0xff] %vm1953_vm7, %v1936_v33  ;;  %v1920_v34 = vpop.permute.xlu0 %1919 }
 0x178   : > { %1961 = vst.msk [vmem:[#allocation2 + $0x38] sm:$0xff] %vm1953_vm7, %v1920_v34 }
 0x17a   : > { %v2117_v35 = vpop.permute.xlu1 %2116 }
 0x17b   : > { %2150 = vst.msk [vmem:[#allocation2 + $0x78] sm:$0xff] %vm2134_vm8, %v2117_v35  ;;  %v2101_v36 = vpop.permute.xlu0 %2100 }
 0x17c   : > { %2142 = vst.msk [vmem:[#allocation2 + $0x38] sm:$0xff] %vm2134_vm8, %v2101_v36 }
 0x17e   : > { %v2550_v37 = vpop.permute.xlu1 %2549 }
 0x17f   : > { %2583 = vst.msk [vmem:[#allocation2 + $0x78] sm:$0xff] %vm2567_vm9, %v2550_v37  ;;  %v2534_v39 = vpop.permute.xlu0 %2533 }
 0x180   : > { %2575 = vst.msk [vmem:[#allocation2 + $0x38] sm:$0xff] %vm2567_vm9, %v2534_v39 }
 0x182   : > { %v2839_v40 = vpop.permute.xlu1 %2838 }
 0x183   : > { %2872 = vst.msk [vmem:[#allocation2 + $0x78] sm:$0xff] %vm2856_vm10, %v2839_v40  ;;  %v2823_v41 = vpop.permute.xlu0 %2822 }
 0x184   : > { %2864 = vst.msk [vmem:[#allocation2 + $0x38] sm:$0xff] %vm2856_vm10, %v2823_v41 }
 0x18a   : > { %v2888_v42 = vld [vmem:[#allocation2 + $0x78] sm:$0xff] }
 0x18b   : > { %3742 = vmatprep.subr.msk.bf16.mxu0 %vm2908_vm11, %v2888_v42  ;;  %v2880_v43 = vld [vmem:[#allocation2 + $0x38] sm:$0xff] }
 0x18c   : > { %v2934_v44 = vsel %vm2908_vm11, %v2880_v43, 0 }
 0x18d   : > { %3732 = vmatpush3.bf16.xpose.msra.mxu0 %v2934_v44 }
 0x193   : > { %v2901_v47 = vpop.permute.xlu1 %2900 }
 0x194   : > { %3734 = vmatmul.mubr.msk.bf16.vlgmr.msra.gmra.mrb[0].mxu0 %vm2908_vm11, %v4683_v38  ;;  %v2896_v45 = vpop.permute.xlu0 %2895 }
 0x267   : > { %v2994_v46 = vpop.f32.mrb[0].mxu0 }
 0x268   : > { %v4760_v48 = vadd.f32 %v2994_v46, %v2896_v45  ;;  %v2996_v49 = vpop.f32.mrb[1].mxu0 }
 0x269   : > { %v4762_v50 = vadd.f32 %v2996_v49, %v2896_v45  ;;  %v2998_v51 = vpop.f32.mrb[2].mxu0 }
 0x26a   : > { %v4765_v52 = vmul.f32 0.70710677, %v4760_v48  ;;  %v4767_v53 = vadd.f32 %v2998_v51, %v2901_v47  ;;  %v3000_v54 = vpop.f32.mrb[3].mxu0 }
 0x26b   : > { %v4770_v55 = vmul.f32 0.70710677, %v4762_v50  ;;  %v4772_v56 = vadd.f32 %v3000_v54, %v2901_v47 }
 0x26c   : > { %v3011_v38 = vand.u32 2147483647, %v4765_v52  ;;  %v4776_v57 = vmul.f32 0.70710677, %v4767_v53  ;;  %vm3091_vm12 = vcmp.ge.f32.partialorder %v4765_v52, 0.0 }
 0x26d   : > { %v3012_v58 = vand.u32 2147483647, %v4770_v55  ;;  %v4780_v59 = vmul.f32 0.70710677, %v4772_v56  ;;  %vm3092_vm13 = vcmp.ge.f32.partialorder %v4770_v55, 0.0 }
 0x26e   : > { %v3015_v60 = vmul.f32 0.3275911, %v3011_v38  ;;  %v3013_v61 = vand.u32 2147483647, %v4776_v57  ;;  %v3067_v7 = vsub.f32 0.0, %v3011_v38  ;;  %vm3093_vm14 = vcmp.ge.f32.partialorder %v4776_v57, 0.0 }
 0x26f   : > { %v3016_v62 = vmul.f32 0.3275911, %v3012_v58  ;;  %v3014_v63 = vand.u32 2147483647, %v4780_v59  ;;  %v3068_v8 = vsub.f32 0.0, %v3012_v58  ;;  %vm3094_vm15 = vcmp.ge.f32.partialorder %v4780_v59, 0.0 }
 0x270   : > { %v3019_v0 = vadd.f32 1.0, %v3015_v60  ;;  %v3017_v1 = vmul.f32 0.3275911, %v3013_v61  ;;  %v3071_v10 = vmul.f32 %v3067_v7, %v3011_v38  ;;  %v3069_v11 = vsub.f32 0.0, %v3013_v61 }
 0x271   : > { %v3020_v2 = vadd.f32 1.0, %v3016_v62  ;;  %v3018_v3 = vmul.f32 0.3275911, %v3014_v63  ;;  %v3072_v13 = vmul.f32 %v3068_v8, %v3012_v58  ;;  %v3070_v15 = vsub.f32 0.0, %v3014_v63 }
 0x272   : > { %4020 = vrcp.f32 %v3019_v0  ;;  %v3021_v4 = vadd.f32 1.0, %v3017_v1  ;;  %v3075_v18 = vmul.f32 1.442695, %v3071_v10  ;;  %v3073_v20 = vmul.f32 %v3069_v11, %v3013_v61 }
 0x273   : > { %4022 = vrcp.f32 %v3020_v2  ;;  %v3022_v5 = vadd.f32 1.0, %v3018_v3  ;;  %v3077_v22 = vmul.f32 1.442695, %v3072_v13  ;;  %v3074_v26 = vmul.f32 %v3070_v15, %v3014_v63 }
 0x274   : > { %4024 = vrcp.f32 %v3021_v4  ;;  %v3079_v31 = vmul.f32 1.442695, %v3073_v20 }
 0x275   : > { %4026 = vrcp.f32 %v3022_v5  ;;  %v3081_v36 = vmul.f32 1.442695, %v3074_v26 }
 0x276   : > { %4028 = vpow2.f32 %v3075_v18 }
 0x277   : > { %4030 = vpow2.f32 %v3077_v22 }
 0x278   : > { %4032 = vpow2.f32 %v3079_v31 }
 0x279   : > { %4034 = vpow2.f32 %v3081_v36 }
 0x27c   : > { %v4021_v9 = vpop.eup %4020 }
 0x27d   : > { %v4023_v12 = vpop.eup %4022  ;;  %v3031_v6 = vmul.f32 1.0614054, %v4021_v9 }
 0x27e   : > { %v3032_v14 = vmul.f32 1.0614054, %v4023_v12  ;;  %v4025_v17 = vpop.eup %4024 }
 0x27f   : > { %v3035_v16 = vadd.f32 -1.4531521, %v3031_v6  ;;  %v3033_v23 = vmul.f32 1.0614054, %v4025_v17  ;;  %v4027_v24 = vpop.eup %4026 }
 0x280   : > { %v3036_v19 = vadd.f32 -1.4531521, %v3032_v14  ;;  %v3034_v29 = vmul.f32 1.0614054, %v4027_v24  ;;  %v4029_v60 = vpop.eup %4028 }
 0x281   : > { %v3039_v21 = vmul.f32 %v4021_v9, %v3035_v16  ;;  %v3037_v28 = vadd.f32 -1.4531521, %v3033_v23  ;;  %v4031_v62 = vpop.eup %4030  ;;  %v3003_v16 = vmul.f32 0.5, %v4760_v48  ;;  %v3005_v48 = vmul.f32 0.5, %v4767_v53 }
 0x282   : > { %v3040_v25 = vmul.f32 %v4023_v12, %v3036_v19  ;;  %v3038_v34 = vadd.f32 -1.4531521, %v3034_v29  ;;  %v4033_v7 = vpop.eup %4032  ;;  %v3004_v19 = vmul.f32 0.5, %v4762_v50  ;;  %v3006_v50 = vmul.f32 0.5, %v4772_v56 }
 0x283   : > { %v3043_v27 = vadd.f32 1.4214138, %v3039_v21  ;;  %v3041_v33 = vmul.f32 %v4025_v17, %v3037_v28  ;;  %v4035_v13 = vpop.eup %4034 }
 0x284   : > { %v3044_v30 = vadd.f32 1.4214138, %v3040_v25  ;;  %v3042_v40 = vmul.f32 %v4027_v24, %v3038_v34 }
 0x285   : > { %v3047_v32 = vmul.f32 %v4021_v9, %v3043_v27  ;;  %v3045_v39 = vadd.f32 1.4214138, %v3041_v33 }
 0x286   : > { %v3048_v35 = vmul.f32 %v4023_v12, %v3044_v30  ;;  %v3046_v44 = vadd.f32 1.4214138, %v3042_v40 }
 0x287   : > { %v3051_v37 = vadd.f32 -0.28449672, %v3047_v32  ;;  %v3049_v43 = vmul.f32 %v4025_v17, %v3045_v39 }
 0x288   : > { %v3052_v41 = vadd.f32 -0.28449672, %v3048_v35  ;;  %v3050_v49 = vmul.f32 %v4027_v24, %v3046_v44 }
 0x289   : > { %v3055_v42 = vmul.f32 %v4021_v9, %v3051_v37  ;;  %v3053_v47 = vadd.f32 -0.28449672, %v3049_v43 }
 0x28a   : > { %v3056_v45 = vmul.f32 %v4023_v12, %v3052_v41  ;;  %v3054_v58 = vadd.f32 -0.28449672, %v3050_v49 }
 0x28b   : > { %v3059_v46 = vadd.f32 0.2548296, %v3055_v42  ;;  %v3057_v38 = vmul.f32 %v4025_v17, %v3053_v47 }
 0x28c   : > { %v3060_v51 = vadd.f32 0.2548296, %v3056_v45  ;;  %v3058_v1 = vmul.f32 %v4027_v24, %v3054_v58 }
 0x28d   : > { %v3063_v54 = vmul.f32 %v4021_v9, %v3059_v46  ;;  %v3061_v0 = vadd.f32 0.2548296, %v3057_v38 }
 0x28e   : > { %v3064_v61 = vmul.f32 %v4023_v12, %v3060_v51  ;;  %v3062_v5 = vadd.f32 0.2548296, %v3058_v1 }
 0x28f   : > { %v3083_v63 = vmul.f32 %v4029_v60, %v3063_v54  ;;  %v3065_v4 = vmul.f32 %v4025_v17, %v3061_v0 }
 0x290   : > { %v3084_v2 = vmul.f32 %v4031_v62, %v3064_v61  ;;  %v3066_v6 = vmul.f32 %v4027_v24, %v3062_v5 }
 0x291   : > { %v3087_v3 = vsub.f32 1.0, %v3083_v63  ;;  %v3085_v11 = vmul.f32 %v4033_v7, %v3065_v4 }
 0x292   : > { %v3088_v8 = vsub.f32 1.0, %v3084_v2  ;;  %v3086_v15 = vmul.f32 %v4035_v13, %v3066_v6 }
 0x293   : > { %v3095_v10 = vsub.f32 0.0, %v3087_v3  ;;  %v3089_v12 = vsub.f32 1.0, %v3085_v11 }
 0x294   : > { %v3096_v9 = vsub.f32 0.0, %v3088_v8  ;;  %v3090_v22 = vsub.f32 1.0, %v3086_v15 }
 0x295   : > { %v3099_v14 = vsel %vm3091_vm12, %v3087_v3, %v3095_v10  ;;  %v3097_v21 = vsub.f32 0.0, %v3089_v12 }
 0x296   : > { %v3103_v18 = vadd.f32 1.0, %v3099_v14  ;;  %v3100_v17 = vsel %vm3092_vm13, %v3088_v8, %v3096_v9  ;;  %v3098_v24 = vsub.f32 0.0, %v3090_v22 }
 0x297   : > { %v3104_v20 = vadd.f32 1.0, %v3100_v17  ;;  %v3101_v55 = vsel %vm3093_vm14, %v3089_v12, %v3097_v21 }
 0x298   : > { %v3107_v52 = vmul.f32 %v3103_v18, %v3003_v16  ;;  %v3105_v25 = vadd.f32 1.0, %v3101_v55  ;;  %v3102_v26 = vsel %vm3094_vm15, %v3090_v22, %v3098_v24 }
 0x299   : > { %v3108_v23 = vmul.f32 %v3104_v20, %v3004_v19  ;;  %v3106_v28 = vadd.f32 1.0, %v3102_v26 }
 0x29a   : > { %3111 = vst [vmem:[%s192_s10] sm:$0xff] %v3107_v52  ;;  %v3109_v27 = vmul.f32 %v3105_v25, %v3005_v48 }
 0x29b   : > { %3112 = vst [vmem:[%s192_s10 + $0x8] sm:$0xff] %v3108_v23  ;;  %v3110_v29 = vmul.f32 %v3106_v28, %v3006_v50 }
 0x29c   : > { %3113 = vst [vmem:[%s192_s10 + $0x10] sm:$0xff] %v3109_v27 }
 0x29d   : > { %3114 = vst [vmem:[%s192_s10 + $0x18] sm:$0xff] %v3110_v29 }
 0x29e PF: > { %s13_s14 = sadd.s32 1, %s4058_s14   ;;  %s4809_s12 = smov %s4054_s13 }
 0x29f   : > { %p10_p5 = scmp.ge.s32.totalorder %s13_s14, 4   ;;  %s4810_s13 = smov %s4812_s15 }
 0x2a1   :  { %12 = sbr.rel (!%p10_p5) target bundleno = 2 (0x2), region = 65 }

</bundles_post_ra>
